<compile_context>
chip_gen: v5e
topology: v5e:2x2
jax: 0.10.0
libtpu: 0.0.40
codegen_flags: <defaults>
</compile_context>

<pallas_src>
import functools

import jax
import jax.numpy as jnp
from jax.experimental import pallas as pl
from jax.experimental.pallas import tpu as pltpu


# ----------------------------------------------------------------------------
# Fused CombinedModel kernel: block-diagonal twin-LSTM recurrence + fused
# decode + fusion head, all in one pallas_call.
# ----------------------------------------------------------------------------
def _combined_kernel(x_ref, wx_ref, wh_ref, b_ref, wdec_ref, bdec_ref,
                     wfc_ref, bfc_ref, out_ref, recon_ref, hh_sc, *, T, B, H):
    H2 = 2 * H

    # All T timesteps' input projections for BOTH encoders in one bf16 MXU
    # pass; the (T*B, 8H) result lives in vregs (no VMEM scratch round trip).
    # Gate layout along 8H: [i | f | o | g], each 2H wide = [gene | smiles].
    xg = (jnp.dot(x_ref[...].astype(jnp.bfloat16),
                  wx_ref[...].astype(jnp.bfloat16),
                  preferred_element_type=jnp.float32)
          + b_ref[...])                                           # (T*B, 8H) f32

    wh_bf = wh_ref[...].astype(jnp.bfloat16)                      # (2H, 8H), cast once

    h = jnp.zeros((B, H2), jnp.float32)                           # [h_gene | h_smiles]
    c = jnp.zeros((B, H2), jnp.float32)

    # Fused recurrence: ONE (B,2H)@(2H,8H) bf16 matmul per step drives both
    # encoders (half the dependent-chain length of two back-to-back LSTMs).
    # T is small and static, so a Python unroll keeps h/c in vregs.
    for t in range(T):
        gates = xg[t * B:(t + 1) * B, :] + jnp.dot(
            h.astype(jnp.bfloat16), wh_bf,
            preferred_element_type=jnp.float32)                   # (B, 8H) f32

        sig = jax.nn.sigmoid(gates[:, :3 * H2])   # [i | f | o] in one EUP slice (lane 0)
        g_g = jnp.tanh(gates[:, 3 * H2:])
        i_g = sig[:, :H2]
        f_g = sig[:, H2:2 * H2]
        o_g = sig[:, 2 * H2:3 * H2]

        c = f_g * c + i_g * g_g                   # f32 elementwise state update
        h = o_g * jnp.tanh(c)
        hh_sc[t * B:(t + 1) * B, :] = h           # history store: off the serial path

    # Fused batched decode for both reconstructions: one bf16 matmul and one
    # (T*B, Vg+Vs) store instead of two narrow ones.
    recon_ref[...] = (jnp.dot(hh_sc[...].astype(jnp.bfloat16),
                              wdec_ref[...].astype(jnp.bfloat16),
                              preferred_element_type=jnp.float32)
                      + bdec_ref[...])

    # CombinedModel head: combined = gene_feat * smiles_feat;
    # output = sigmoid(combined @ W_fc + b_fc) as VPU multiply + lane reduce.
    combined = h[:, :H] * h[:, H:]                                # (B, H)
    logits = (jnp.sum(combined * wfc_ref[...], axis=-1, keepdims=True)
              + bfc_ref[...])                                     # (B, 1)
    out_ref[...] = jax.nn.sigmoid(logits)


def combined_model_pallas(x_cat, fp, *, T, B, H):
    Vc = fp["wdec"].shape[1]
    kernel = functools.partial(_combined_kernel, T=T, B=B, H=H)
    return pl.pallas_call(
        kernel,
        out_shape=(jax.ShapeDtypeStruct((B, 1), jnp.float32),
                   jax.ShapeDtypeStruct((T * B, Vc), jnp.float32)),
        # Single tiny scratch: hidden-state history feeding the batched decode.
        scratch_shapes=[pltpu.VMEM((T * B, 2 * H), jnp.float32)],
    )(x_cat, fp["wx"], fp["wh"], fp["b"], fp["wdec"], fp["bdec"],
      fp["w_fc_row"], fp["b_fc"])


# ----------------------------------------------------------------------------
# Parameter construction and one-time fusion into block-diagonal weights.
# ----------------------------------------------------------------------------
def make_lstm_params(key, in_dim, hidden_dim, out_dim):
    k = jax.random.split(key, 6)
    s = 0.1
    return dict(
        # gate order along the 4H axis: [i, f, o, g]
        # TODO(synk): PyTorch nn.LSTM uses [i, f, g, o] and separate b_ih/b_hh;
        # reorder/merge along the 4H axis if trained torch weights are loaded.
        wx=s * jax.random.normal(k[0], (in_dim, 4 * hidden_dim), jnp.float32),
        wh=s * jax.random.normal(k[1], (hidden_dim, 4 * hidden_dim), jnp.float32),
        b=s * jax.random.normal(k[2], (1, 4 * hidden_dim), jnp.float32),
        wdec=s * jax.random.normal(k[3], (hidden_dim, out_dim), jnp.float32),
        bdec=s * jax.random.normal(k[4], (1, out_dim), jnp.float32),
    )


def _fuse_gate_matrix(wg, ws, H):
    """Fuse two (D,4H) gate matrices into (D_g+D_s, 8H).

    Column layout per gate (order [i,f,o,g]): [gene(H) | smiles(H)], so the
    fused recurrence on h_cat = [h_gene | h_smiles] reproduces both encoders
    exactly (off-diagonal blocks are zero)."""
    Dg, Ds = wg.shape[0], ws.shape[0]
    zg = jnp.zeros((Dg, H), wg.dtype)
    zs = jnp.zeros((Ds, H), ws.dtype)
    blocks = []
    for gate in range(4):
        top = jnp.concatenate([wg[:, gate * H:(gate + 1) * H], zg], axis=1)
        bot = jnp.concatenate([zs, ws[:, gate * H:(gate + 1) * H]], axis=1)
        blocks.append(jnp.concatenate([top, bot], axis=0))        # (Dg+Ds, 2H)
    return jnp.concatenate(blocks, axis=1)                        # (Dg+Ds, 8H)


def _fuse_gate_bias(bg, bs, H):
    parts = []
    for gate in range(4):
        parts.append(bg[:, gate * H:(gate + 1) * H])
        parts.append(bs[:, gate * H:(gate + 1) * H])
    return jnp.concatenate(parts, axis=1)                         # (1, 8H)


def _block_diag(a, b):
    m1, n1 = a.shape
    m2, n2 = b.shape
    top = jnp.concatenate([a, jnp.zeros((m1, n2), a.dtype)], axis=1)
    bot = jnp.concatenate([jnp.zeros((m2, n1), b.dtype), b], axis=1)
    return jnp.concatenate([top, bot], axis=0)


def fuse_combined_params(params, H):
    gp, sp = params["gene_lstm"], params["smiles_lstm"]
    return dict(
        wx=_fuse_gate_matrix(gp["wx"], sp["wx"], H),              # (2I, 8H)
        wh=_fuse_gate_matrix(gp["wh"], sp["wh"], H),              # (2H, 8H)
        b=_fuse_gate_bias(gp["b"], sp["b"], H),                   # (1, 8H)
        wdec=_block_diag(gp["wdec"], sp["wdec"]),                 # (2H, Vg+Vs)
        bdec=jnp.concatenate([gp["bdec"], sp["bdec"]], axis=1),   # (1, Vg+Vs)
        w_fc_row=params["w_fc_row"],                              # (1, H)
        b_fc=params["b_fc"],                                      # (1, 1)
    )


# ----------------------------------------------------------------------------
# Full CombinedModel forward.
# ----------------------------------------------------------------------------
def combined_model_forward(gene_tokens, smiles_tokens, params, fused):
    B, T = gene_tokens.shape
    H = params["gene_lstm"]["wh"].shape[0]
    Vg = params["gene_lstm"]["wdec"].shape[1]

    # Glue (plain JAX, noise at this size): embedding lookup + time-major
    # flatten + feature concat so the kernel body is purely 2-D and fused.
    # TODO(synk): for large T*B, fold the gather/transpose into the kernel via
    # scalar-prefetched token ids instead of materializing (T*B, 2I) in HBM.
    gene_emb = params["gene_embed"][gene_tokens]                  # (B, T, I)
    smiles_emb = params["smiles_embed"][smiles_tokens]            # (B, T, I)
    gene_x = jnp.transpose(gene_emb, (1, 0, 2)).reshape(T * B, -1)
    smiles_x = jnp.transpose(smiles_emb, (1, 0, 2)).reshape(T * B, -1)
    x_cat = jnp.concatenate([gene_x, smiles_x], axis=1)           # (T*B, 2I)

    output, recon_cat = combined_model_pallas(x_cat, fused, T=T, B=B, H=H)

    reconstructed_gene = recon_cat[:, :Vg].reshape(T, B, Vg)
    reconstructed_smiles = recon_cat[:, Vg:].reshape(T, B, -1)
    return output, reconstructed_gene, reconstructed_smiles


if __name__ == "__main__":
    B, T, H = 2, 8, 32           # batch, seq_length, hidden_dim
    I_EMB = 8                    # embedding dim fed to the LSTMs
    V_GENE, V_SMILES = 16, 16    # vocab sizes (reconstruction logit widths)

    root = jax.random.PRNGKey(0)
    keys = jax.random.split(root, 8)

    params = {
        "gene_embed": 0.1 * jax.random.normal(keys[0], (V_GENE, I_EMB), jnp.float32),
        "smiles_embed": 0.1 * jax.random.normal(keys[1], (V_SMILES, I_EMB), jnp.float32),
        "gene_lstm": make_lstm_params(keys[2], I_EMB, H, V_GENE),
        "smiles_lstm": make_lstm_params(keys[3], I_EMB, H, V_SMILES),
        # fc weight stored directly as a (1, H) row for the broadcast-reduce head
        "w_fc_row": 0.1 * jax.random.normal(keys[4], (1, H), jnp.float32),
        "b_fc": 0.1 * jax.random.normal(keys[5], (1, 1), jnp.float32),
    }
    # One-time weight fusion (block-diagonal twin-LSTM layout), outside forward.
    fused = jax.tree_util.tree_map(lambda x: x, fuse_combined_params(params, H))

    gene_tokens = jax.random.randint(keys[6], (B, T), 0, V_GENE, jnp.int32)
    smiles_tokens = jax.random.randint(keys[7], (B, T), 0, V_SMILES, jnp.int32)

    output, recon_gene, recon_smiles = combined_model_forward(
        gene_tokens, smiles_tokens, params, fused)
    jax.block_until_ready((output, recon_gene, recon_smiles))

    assert output.shape == (B, 1)
    assert recon_gene.shape == (T, B, V_GENE)
    assert recon_smiles.shape == (T, B, V_SMILES)
    assert bool(jnp.all((output >= 0.0) & (output <= 1.0)))
    assert bool(jnp.all(jnp.isfinite(recon_gene)))
    assert bool(jnp.all(jnp.isfinite(recon_smiles)))
    # TODO(synk): exact GeneLSTM/SMILESLSTM architectures are not specified in
    # the reference; they are realized as single-layer LSTM auto-encoders here.
    print("KERNEL_OK")
</pallas_src>

<mosaic_0001>
module attributes {stable_mosaic.version = 11 : i64} {
  func.func @_combined_kernel(%arg0: memref<16x16xf32, #tpu.memory_space<vmem>>, %arg1: memref<16x256xf32, #tpu.memory_space<vmem>>, %arg2: memref<64x256xf32, #tpu.memory_space<vmem>>, %arg3: memref<1x256xf32, #tpu.memory_space<vmem>>, %arg4: memref<64x32xf32, #tpu.memory_space<vmem>>, %arg5: memref<1x32xf32, #tpu.memory_space<vmem>>, %arg6: memref<1x32xf32, #tpu.memory_space<vmem>>, %arg7: memref<1x1xf32, #tpu.memory_space<vmem>>, %arg8: memref<2x1xf32, #tpu.memory_space<vmem>>, %arg9: memref<16x32xf32, #tpu.memory_space<vmem>>, %arg10: memref<16x64xf32, #tpu.memory_space<vmem>>) attributes {dimension_semantics = [], scalar_prefetch = 0 : i64, scratch_operands = 1 : i64, tpu.core_type = #tpu.core_type<tc>} {
    %c0 = arith.constant 0 : index
    %c0_0 = arith.constant 0 : index
    %0 = vector.load %arg0[%c0, %c0_0] : memref<16x16xf32, #tpu.memory_space<vmem>>, vector<16x16xf32>
    %1 = arith.truncf %0 : vector<16x16xf32> to vector<16x16xbf16>
    %c0_1 = arith.constant 0 : index
    %c0_2 = arith.constant 0 : index
    %2 = vector.load %arg1[%c0_1, %c0_2] : memref<16x256xf32, #tpu.memory_space<vmem>>, vector<16x256xf32>
    %3 = arith.truncf %2 : vector<16x256xf32> to vector<16x256xbf16>
    %cst = arith.constant dense<0.000000e+00> : vector<16x256xf32>
    %4 = tpu.matmul %1, %3, %cst {dimension_numbers = #tpu.dot_dimension_numbers<[1], [0], [0], [1], [0, 0, 1, 1], [], []>} : vector<16x16xbf16>, vector<16x256xbf16>, vector<16x256xf32> -> vector<16x256xf32>
    %c0_3 = arith.constant 0 : index
    %c0_4 = arith.constant 0 : index
    %5 = vector.load %arg3[%c0_3, %c0_4] : memref<1x256xf32, #tpu.memory_space<vmem>>, vector<1x256xf32>
    %6 = vector.broadcast %5 : vector<1x256xf32> to vector<16x256xf32>
    %7 = arith.addf %4, %6 : vector<16x256xf32>
    %c0_5 = arith.constant 0 : index
    %c0_6 = arith.constant 0 : index
    %8 = vector.load %arg2[%c0_5, %c0_6] : memref<64x256xf32, #tpu.memory_space<vmem>>, vector<64x256xf32>
    %9 = arith.truncf %8 : vector<64x256xf32> to vector<64x256xbf16>
    %cst_7 = arith.constant 0.000000e+00 : f32
    %10 = vector.broadcast %cst_7 : f32 to vector<2x64xf32>
    %cst_8 = arith.constant 0.000000e+00 : f32
    %11 = vector.broadcast %cst_8 : f32 to vector<2x64xf32>
    %12 = vector.extract_strided_slice %7 {offsets = [0, 0], sizes = [2, 256], strides = [1, 1]} : vector<16x256xf32> to vector<2x256xf32>
    %13 = arith.truncf %10 : vector<2x64xf32> to vector<2x64xbf16>
    %cst_9 = arith.constant dense<0.000000e+00> : vector<2x256xf32>
    %14 = tpu.matmul %13, %9, %cst_9 {dimension_numbers = #tpu.dot_dimension_numbers<[1], [0], [0], [1], [0, 0, 1, 1], [], []>} : vector<2x64xbf16>, vector<64x256xbf16>, vector<2x256xf32> -> vector<2x256xf32>
    %15 = arith.addf %12, %14 : vector<2x256xf32>
    %16 = vector.extract_strided_slice %15 {offsets = [0, 0], sizes = [2, 192], strides = [1, 1]} : vector<2x256xf32> to vector<2x192xf32>
    %17 = arith.negf %16 : vector<2x192xf32>
    %18 = math.exp %17 : vector<2x192xf32>
    %cst_10 = arith.constant 1.000000e+00 : f32
    %19 = vector.broadcast %cst_10 : f32 to vector<2x192xf32>
    %20 = arith.addf %19, %18 : vector<2x192xf32>
    %21 = arith.divf %19, %20 : vector<2x192xf32>
    %22 = vector.extract_strided_slice %15 {offsets = [0, 192], sizes = [2, 64], strides = [1, 1]} : vector<2x256xf32> to vector<2x64xf32>
    %23 = math.tanh %22 : vector<2x64xf32>
    %24 = vector.extract_strided_slice %21 {offsets = [0, 0], sizes = [2, 64], strides = [1, 1]} : vector<2x192xf32> to vector<2x64xf32>
    %25 = vector.extract_strided_slice %21 {offsets = [0, 64], sizes = [2, 64], strides = [1, 1]} : vector<2x192xf32> to vector<2x64xf32>
    %26 = vector.extract_strided_slice %21 {offsets = [0, 128], sizes = [2, 64], strides = [1, 1]} : vector<2x192xf32> to vector<2x64xf32>
    %27 = arith.mulf %25, %11 : vector<2x64xf32>
    %28 = arith.mulf %24, %23 : vector<2x64xf32>
    %29 = arith.addf %27, %28 : vector<2x64xf32>
    %30 = math.tanh %29 : vector<2x64xf32>
    %31 = arith.mulf %26, %30 : vector<2x64xf32>
    %c0_11 = arith.constant 0 : index
    %c0_12 = arith.constant 0 : index
    %32 = vector.load %arg10[%c0_11, %c0_12] : memref<16x64xf32, #tpu.memory_space<vmem>>, vector<2x64xf32>
    tpu.vector_store %arg10[%c0_11, %c0_12], %31 {strides = array<i32>} : memref<16x64xf32, #tpu.memory_space<vmem>>, vector<2x64xf32>,
    %33 = vector.extract_strided_slice %7 {offsets = [2, 0], sizes = [2, 256], strides = [1, 1]} : vector<16x256xf32> to vector<2x256xf32>
    %34 = arith.truncf %31 : vector<2x64xf32> to vector<2x64xbf16>
    %cst_13 = arith.constant dense<0.000000e+00> : vector<2x256xf32>
    %35 = tpu.matmul %34, %9, %cst_13 {dimension_numbers = #tpu.dot_dimension_numbers<[1], [0], [0], [1], [0, 0, 1, 1], [], []>} : vector<2x64xbf16>, vector<64x256xbf16>, vector<2x256xf32> -> vector<2x256xf32>
    %36 = arith.addf %33, %35 : vector<2x256xf32>
    %37 = vector.extract_strided_slice %36 {offsets = [0, 0], sizes = [2, 192], strides = [1, 1]} : vector<2x256xf32> to vector<2x192xf32>
    %38 = arith.negf %37 : vector<2x192xf32>
    %39 = math.exp %38 : vector<2x192xf32>
    %cst_14 = arith.constant 1.000000e+00 : f32
    %40 = vector.broadcast %cst_14 : f32 to vector<2x192xf32>
    %41 = arith.addf %40, %39 : vector<2x192xf32>
    %42 = arith.divf %40, %41 : vector<2x192xf32>
    %43 = vector.extract_strided_slice %36 {offsets = [0, 192], sizes = [2, 64], strides = [1, 1]} : vector<2x256xf32> to vector<2x64xf32>
    %44 = math.tanh %43 : vector<2x64xf32>
    %45 = vector.extract_strided_slice %42 {offsets = [0, 0], sizes = [2, 64], strides = [1, 1]} : vector<2x192xf32> to vector<2x64xf32>
    %46 = vector.extract_strided_slice %42 {offsets = [0, 64], sizes = [2, 64], strides = [1, 1]} : vector<2x192xf32> to vector<2x64xf32>
    %47 = vector.extract_strided_slice %42 {offsets = [0, 128], sizes = [2, 64], strides = [1, 1]} : vector<2x192xf32> to vector<2x64xf32>
    %48 = arith.mulf %46, %29 : vector<2x64xf32>
    %49 = arith.mulf %45, %44 : vector<2x64xf32>
    %50 = arith.addf %48, %49 : vector<2x64xf32>
    %51 = math.tanh %50 : vector<2x64xf32>
    %52 = arith.mulf %47, %51 : vector<2x64xf32>
    %c2 = arith.constant 2 : index
    %c0_15 = arith.constant 0 : index
    %53 = vector.load %arg10[%c2, %c0_15] : memref<16x64xf32, #tpu.memory_space<vmem>>, vector<2x64xf32>
    tpu.vector_store %arg10[%c2, %c0_15], %52 {strides = array<i32>} : memref<16x64xf32, #tpu.memory_space<vmem>>, vector<2x64xf32>,
    %54 = vector.extract_strided_slice %7 {offsets = [4, 0], sizes = [2, 256], strides = [1, 1]} : vector<16x256xf32> to vector<2x256xf32>
    %55 = arith.truncf %52 : vector<2x64xf32> to vector<2x64xbf16>
    %cst_16 = arith.constant dense<0.000000e+00> : vector<2x256xf32>
    %56 = tpu.matmul %55, %9, %cst_16 {dimension_numbers = #tpu.dot_dimension_numbers<[1], [0], [0], [1], [0, 0, 1, 1], [], []>} : vector<2x64xbf16>, vector<64x256xbf16>, vector<2x256xf32> -> vector<2x256xf32>
    %57 = arith.addf %54, %56 : vector<2x256xf32>
    %58 = vector.extract_strided_slice %57 {offsets = [0, 0], sizes = [2, 192], strides = [1, 1]} : vector<2x256xf32> to vector<2x192xf32>
    %59 = arith.negf %58 : vector<2x192xf32>
    %60 = math.exp %59 : vector<2x192xf32>
    %cst_17 = arith.constant 1.000000e+00 : f32
    %61 = vector.broadcast %cst_17 : f32 to vector<2x192xf32>
    %62 = arith.addf %61, %60 : vector<2x192xf32>
    %63 = arith.divf %61, %62 : vector<2x192xf32>
    %64 = vector.extract_strided_slice %57 {offsets = [0, 192], sizes = [2, 64], strides = [1, 1]} : vector<2x256xf32> to vector<2x64xf32>
    %65 = math.tanh %64 : vector<2x64xf32>
    %66 = vector.extract_strided_slice %63 {offsets = [0, 0], sizes = [2, 64], strides = [1, 1]} : vector<2x192xf32> to vector<2x64xf32>
    %67 = vector.extract_strided_slice %63 {offsets = [0, 64], sizes = [2, 64], strides = [1, 1]} : vector<2x192xf32> to vector<2x64xf32>
    %68 = vector.extract_strided_slice %63 {offsets = [0, 128], sizes = [2, 64], strides = [1, 1]} : vector<2x192xf32> to vector<2x64xf32>
    %69 = arith.mulf %67, %50 : vector<2x64xf32>
    %70 = arith.mulf %66, %65 : vector<2x64xf32>
    %71 = arith.addf %69, %70 : vector<2x64xf32>
    %72 = math.tanh %71 : vector<2x64xf32>
    %73 = arith.mulf %68, %72 : vector<2x64xf32>
    %c4 = arith.constant 4 : index
    %c0_18 = arith.constant 0 : index
    %74 = vector.load %arg10[%c4, %c0_18] : memref<16x64xf32, #tpu.memory_space<vmem>>, vector<2x64xf32>
    tpu.vector_store %arg10[%c4, %c0_18], %73 {strides = array<i32>} : memref<16x64xf32, #tpu.memory_space<vmem>>, vector<2x64xf32>,
    %75 = vector.extract_strided_slice %7 {offsets = [6, 0], sizes = [2, 256], strides = [1, 1]} : vector<16x256xf32> to vector<2x256xf32>
    %76 = arith.truncf %73 : vector<2x64xf32> to vector<2x64xbf16>
    %cst_19 = arith.constant dense<0.000000e+00> : vector<2x256xf32>
    %77 = tpu.matmul %76, %9, %cst_19 {dimension_numbers = #tpu.dot_dimension_numbers<[1], [0], [0], [1], [0, 0, 1, 1], [], []>} : vector<2x64xbf16>, vector<64x256xbf16>, vector<2x256xf32> -> vector<2x256xf32>
    %78 = arith.addf %75, %77 : vector<2x256xf32>
    %79 = vector.extract_strided_slice %78 {offsets = [0, 0], sizes = [2, 192], strides = [1, 1]} : vector<2x256xf32> to vector<2x192xf32>
    %80 = arith.negf %79 : vector<2x192xf32>
    %81 = math.exp %80 : vector<2x192xf32>
    %cst_20 = arith.constant 1.000000e+00 : f32
    %82 = vector.broadcast %cst_20 : f32 to vector<2x192xf32>
    %83 = arith.addf %82, %81 : vector<2x192xf32>
    %84 = arith.divf %82, %83 : vector<2x192xf32>
    %85 = vector.extract_strided_slice %78 {offsets = [0, 192], sizes = [2, 64], strides = [1, 1]} : vector<2x256xf32> to vector<2x64xf32>
    %86 = math.tanh %85 : vector<2x64xf32>
    %87 = vector.extract_strided_slice %84 {offsets = [0, 0], sizes = [2, 64], strides = [1, 1]} : vector<2x192xf32> to vector<2x64xf32>
    %88 = vector.extract_strided_slice %84 {offsets = [0, 64], sizes = [2, 64], strides = [1, 1]} : vector<2x192xf32> to vector<2x64xf32>
    %89 = vector.extract_strided_slice %84 {offsets = [0, 128], sizes = [2, 64], strides = [1, 1]} : vector<2x192xf32> to vector<2x64xf32>
    %90 = arith.mulf %88, %71 : vector<2x64xf32>
    %91 = arith.mulf %87, %86 : vector<2x64xf32>
    %92 = arith.addf %90, %91 : vector<2x64xf32>
    %93 = math.tanh %92 : vector<2x64xf32>
    %94 = arith.mulf %89, %93 : vector<2x64xf32>
    %c6 = arith.constant 6 : index
    %c0_21 = arith.constant 0 : index
    %95 = vector.load %arg10[%c6, %c0_21] : memref<16x64xf32, #tpu.memory_space<vmem>>, vector<2x64xf32>
    tpu.vector_store %arg10[%c6, %c0_21], %94 {strides = array<i32>} : memref<16x64xf32, #tpu.memory_space<vmem>>, vector<2x64xf32>,
    %96 = vector.extract_strided_slice %7 {offsets = [8, 0], sizes = [2, 256], strides = [1, 1]} : vector<16x256xf32> to vector<2x256xf32>
    %97 = arith.truncf %94 : vector<2x64xf32> to vector<2x64xbf16>
    %cst_22 = arith.constant dense<0.000000e+00> : vector<2x256xf32>
    %98 = tpu.matmul %97, %9, %cst_22 {dimension_numbers = #tpu.dot_dimension_numbers<[1], [0], [0], [1], [0, 0, 1, 1], [], []>} : vector<2x64xbf16>, vector<64x256xbf16>, vector<2x256xf32> -> vector<2x256xf32>
    %99 = arith.addf %96, %98 : vector<2x256xf32>
    %100 = vector.extract_strided_slice %99 {offsets = [0, 0], sizes = [2, 192], strides = [1, 1]} : vector<2x256xf32> to vector<2x192xf32>
    %101 = arith.negf %100 : vector<2x192xf32>
    %102 = math.exp %101 : vector<2x192xf32>
    %cst_23 = arith.constant 1.000000e+00 : f32
    %103 = vector.broadcast %cst_23 : f32 to vector<2x192xf32>
    %104 = arith.addf %103, %102 : vector<2x192xf32>
    %105 = arith.divf %103, %104 : vector<2x192xf32>
    %106 = vector.extract_strided_slice %99 {offsets = [0, 192], sizes = [2, 64], strides = [1, 1]} : vector<2x256xf32> to vector<2x64xf32>
    %107 = math.tanh %106 : vector<2x64xf32>
    %108 = vector.extract_strided_slice %105 {offsets = [0, 0], sizes = [2, 64], strides = [1, 1]} : vector<2x192xf32> to vector<2x64xf32>
    %109 = vector.extract_strided_slice %105 {offsets = [0, 64], sizes = [2, 64], strides = [1, 1]} : vector<2x192xf32> to vector<2x64xf32>
    %110 = vector.extract_strided_slice %105 {offsets = [0, 128], sizes = [2, 64], strides = [1, 1]} : vector<2x192xf32> to vector<2x64xf32>
    %111 = arith.mulf %109, %92 : vector<2x64xf32>
    %112 = arith.mulf %108, %107 : vector<2x64xf32>
    %113 = arith.addf %111, %112 : vector<2x64xf32>
    %114 = math.tanh %113 : vector<2x64xf32>
    %115 = arith.mulf %110, %114 : vector<2x64xf32>
    %c8 = arith.constant 8 : index
    %c0_24 = arith.constant 0 : index
    %116 = vector.load %arg10[%c8, %c0_24] : memref<16x64xf32, #tpu.memory_space<vmem>>, vector<2x64xf32>
    tpu.vector_store %arg10[%c8, %c0_24], %115 {strides = array<i32>} : memref<16x64xf32, #tpu.memory_space<vmem>>, vector<2x64xf32>,
    %117 = vector.extract_strided_slice %7 {offsets = [10, 0], sizes = [2, 256], strides = [1, 1]} : vector<16x256xf32> to vector<2x256xf32>
    %118 = arith.truncf %115 : vector<2x64xf32> to vector<2x64xbf16>
    %cst_25 = arith.constant dense<0.000000e+00> : vector<2x256xf32>
    %119 = tpu.matmul %118, %9, %cst_25 {dimension_numbers = #tpu.dot_dimension_numbers<[1], [0], [0], [1], [0, 0, 1, 1], [], []>} : vector<2x64xbf16>, vector<64x256xbf16>, vector<2x256xf32> -> vector<2x256xf32>
    %120 = arith.addf %117, %119 : vector<2x256xf32>
    %121 = vector.extract_strided_slice %120 {offsets = [0, 0], sizes = [2, 192], strides = [1, 1]} : vector<2x256xf32> to vector<2x192xf32>
    %122 = arith.negf %121 : vector<2x192xf32>
    %123 = math.exp %122 : vector<2x192xf32>
    %cst_26 = arith.constant 1.000000e+00 : f32
    %124 = vector.broadcast %cst_26 : f32 to vector<2x192xf32>
    %125 = arith.addf %124, %123 : vector<2x192xf32>
    %126 = arith.divf %124, %125 : vector<2x192xf32>
    %127 = vector.extract_strided_slice %120 {offsets = [0, 192], sizes = [2, 64], strides = [1, 1]} : vector<2x256xf32> to vector<2x64xf32>
    %128 = math.tanh %127 : vector<2x64xf32>
    %129 = vector.extract_strided_slice %126 {offsets = [0, 0], sizes = [2, 64], strides = [1, 1]} : vector<2x192xf32> to vector<2x64xf32>
    %130 = vector.extract_strided_slice %126 {offsets = [0, 64], sizes = [2, 64], strides = [1, 1]} : vector<2x192xf32> to vector<2x64xf32>
    %131 = vector.extract_strided_slice %126 {offsets = [0, 128], sizes = [2, 64], strides = [1, 1]} : vector<2x192xf32> to vector<2x64xf32>
    %132 = arith.mulf %130, %113 : vector<2x64xf32>
    %133 = arith.mulf %129, %128 : vector<2x64xf32>
    %134 = arith.addf %132, %133 : vector<2x64xf32>
    %135 = math.tanh %134 : vector<2x64xf32>
    %136 = arith.mulf %131, %135 : vector<2x64xf32>
    %c10 = arith.constant 10 : index
    %c0_27 = arith.constant 0 : index
    %137 = vector.load %arg10[%c10, %c0_27] : memref<16x64xf32, #tpu.memory_space<vmem>>, vector<2x64xf32>
    tpu.vector_store %arg10[%c10, %c0_27], %136 {strides = array<i32>} : memref<16x64xf32, #tpu.memory_space<vmem>>, vector<2x64xf32>,
    %138 = vector.extract_strided_slice %7 {offsets = [12, 0], sizes = [2, 256], strides = [1, 1]} : vector<16x256xf32> to vector<2x256xf32>
    %139 = arith.truncf %136 : vector<2x64xf32> to vector<2x64xbf16>
    %cst_28 = arith.constant dense<0.000000e+00> : vector<2x256xf32>
    %140 = tpu.matmul %139, %9, %cst_28 {dimension_numbers = #tpu.dot_dimension_numbers<[1], [0], [0], [1], [0, 0, 1, 1], [], []>} : vector<2x64xbf16>, vector<64x256xbf16>, vector<2x256xf32> -> vector<2x256xf32>
    %141 = arith.addf %138, %140 : vector<2x256xf32>
    %142 = vector.extract_strided_slice %141 {offsets = [0, 0], sizes = [2, 192], strides = [1, 1]} : vector<2x256xf32> to vector<2x192xf32>
    %143 = arith.negf %142 : vector<2x192xf32>
    %144 = math.exp %143 : vector<2x192xf32>
    %cst_29 = arith.constant 1.000000e+00 : f32
    %145 = vector.broadcast %cst_29 : f32 to vector<2x192xf32>
    %146 = arith.addf %145, %144 : vector<2x192xf32>
    %147 = arith.divf %145, %146 : vector<2x192xf32>
    %148 = vector.extract_strided_slice %141 {offsets = [0, 192], sizes = [2, 64], strides = [1, 1]} : vector<2x256xf32> to vector<2x64xf32>
    %149 = math.tanh %148 : vector<2x64xf32>
    %150 = vector.extract_strided_slice %147 {offsets = [0, 0], sizes = [2, 64], strides = [1, 1]} : vector<2x192xf32> to vector<2x64xf32>
    %151 = vector.extract_strided_slice %147 {offsets = [0, 64], sizes = [2, 64], strides = [1, 1]} : vector<2x192xf32> to vector<2x64xf32>
    %152 = vector.extract_strided_slice %147 {offsets = [0, 128], sizes = [2, 64], strides = [1, 1]} : vector<2x192xf32> to vector<2x64xf32>
    %153 = arith.mulf %151, %134 : vector<2x64xf32>
    %154 = arith.mulf %150, %149 : vector<2x64xf32>
    %155 = arith.addf %153, %154 : vector<2x64xf32>
    %156 = math.tanh %155 : vector<2x64xf32>
    %157 = arith.mulf %152, %156 : vector<2x64xf32>
    %c12 = arith.constant 12 : index
    %c0_30 = arith.constant 0 : index
    %158 = vector.load %arg10[%c12, %c0_30] : memref<16x64xf32, #tpu.memory_space<vmem>>, vector<2x64xf32>
    tpu.vector_store %arg10[%c12, %c0_30], %157 {strides = array<i32>} : memref<16x64xf32, #tpu.memory_space<vmem>>, vector<2x64xf32>,
    %159 = vector.extract_strided_slice %7 {offsets = [14, 0], sizes = [2, 256], strides = [1, 1]} : vector<16x256xf32> to vector<2x256xf32>
    %160 = arith.truncf %157 : vector<2x64xf32> to vector<2x64xbf16>
    %cst_31 = arith.constant dense<0.000000e+00> : vector<2x256xf32>
    %161 = tpu.matmul %160, %9, %cst_31 {dimension_numbers = #tpu.dot_dimension_numbers<[1], [0], [0], [1], [0, 0, 1, 1], [], []>} : vector<2x64xbf16>, vector<64x256xbf16>, vector<2x256xf32> -> vector<2x256xf32>
    %162 = arith.addf %159, %161 : vector<2x256xf32>
    %163 = vector.extract_strided_slice %162 {offsets = [0, 0], sizes = [2, 192], strides = [1, 1]} : vector<2x256xf32> to vector<2x192xf32>
    %164 = arith.negf %163 : vector<2x192xf32>
    %165 = math.exp %164 : vector<2x192xf32>
    %cst_32 = arith.constant 1.000000e+00 : f32
    %166 = vector.broadcast %cst_32 : f32 to vector<2x192xf32>
    %167 = arith.addf %166, %165 : vector<2x192xf32>
    %168 = arith.divf %166, %167 : vector<2x192xf32>
    %169 = vector.extract_strided_slice %162 {offsets = [0, 192], sizes = [2, 64], strides = [1, 1]} : vector<2x256xf32> to vector<2x64xf32>
    %170 = math.tanh %169 : vector<2x64xf32>
    %171 = vector.extract_strided_slice %168 {offsets = [0, 0], sizes = [2, 64], strides = [1, 1]} : vector<2x192xf32> to vector<2x64xf32>
    %172 = vector.extract_strided_slice %168 {offsets = [0, 64], sizes = [2, 64], strides = [1, 1]} : vector<2x192xf32> to vector<2x64xf32>
    %173 = vector.extract_strided_slice %168 {offsets = [0, 128], sizes = [2, 64], strides = [1, 1]} : vector<2x192xf32> to vector<2x64xf32>
    %174 = arith.mulf %172, %155 : vector<2x64xf32>
    %175 = arith.mulf %171, %170 : vector<2x64xf32>
    %176 = arith.addf %174, %175 : vector<2x64xf32>
    %177 = math.tanh %176 : vector<2x64xf32>
    %178 = arith.mulf %173, %177 : vector<2x64xf32>
    %c14 = arith.constant 14 : index
    %c0_33 = arith.constant 0 : index
    %179 = vector.load %arg10[%c14, %c0_33] : memref<16x64xf32, #tpu.memory_space<vmem>>, vector<2x64xf32>
    tpu.vector_store %arg10[%c14, %c0_33], %178 {strides = array<i32>} : memref<16x64xf32, #tpu.memory_space<vmem>>, vector<2x64xf32>,
    %c0_34 = arith.constant 0 : index
    %c0_35 = arith.constant 0 : index
    %180 = vector.load %arg10[%c0_34, %c0_35] : memref<16x64xf32, #tpu.memory_space<vmem>>, vector<16x64xf32>
    %181 = arith.truncf %180 : vector<16x64xf32> to vector<16x64xbf16>
    %c0_36 = arith.constant 0 : index
    %c0_37 = arith.constant 0 : index
    %182 = vector.load %arg4[%c0_36, %c0_37] : memref<64x32xf32, #tpu.memory_space<vmem>>, vector<64x32xf32>
    %183 = arith.truncf %182 : vector<64x32xf32> to vector<64x32xbf16>
    %cst_38 = arith.constant dense<0.000000e+00> : vector<16x32xf32>
    %184 = tpu.matmul %181, %183, %cst_38 {dimension_numbers = #tpu.dot_dimension_numbers<[1], [0], [0], [1], [0, 0, 1, 1], [], []>} : vector<16x64xbf16>, vector<64x32xbf16>, vector<16x32xf32> -> vector<16x32xf32>
    %c0_39 = arith.constant 0 : index
    %c0_40 = arith.constant 0 : index
    %185 = vector.load %arg5[%c0_39, %c0_40] : memref<1x32xf32, #tpu.memory_space<vmem>>, vector<1x32xf32>
    %186 = vector.broadcast %185 : vector<1x32xf32> to vector<16x32xf32>
    %187 = arith.addf %184, %186 : vector<16x32xf32>
    %c0_41 = arith.constant 0 : index
    %c0_42 = arith.constant 0 : index
    %188 = vector.load %arg9[%c0_41, %c0_42] : memref<16x32xf32, #tpu.memory_space<vmem>>, vector<16x32xf32>
    tpu.vector_store %arg9[%c0_41, %c0_42], %187 {strides = array<i32>} : memref<16x32xf32, #tpu.memory_space<vmem>>, vector<16x32xf32>,
    %189 = vector.extract_strided_slice %178 {offsets = [0, 0], sizes = [2, 32], strides = [1, 1]} : vector<2x64xf32> to vector<2x32xf32>
    %190 = vector.extract_strided_slice %178 {offsets = [0, 32], sizes = [2, 32], strides = [1, 1]} : vector<2x64xf32> to vector<2x32xf32>
    %191 = arith.mulf %189, %190 : vector<2x32xf32>
    %c0_43 = arith.constant 0 : index
    %c0_44 = arith.constant 0 : index
    %192 = vector.load %arg6[%c0_43, %c0_44] : memref<1x32xf32, #tpu.memory_space<vmem>>, vector<1x32xf32>
    %193 = vector.broadcast %192 : vector<1x32xf32> to vector<2x32xf32>
    %194 = arith.mulf %191, %193 : vector<2x32xf32>
    %cst_45 = arith.constant dense<0.000000e+00> : vector<2xf32>
    %195 = vector.multi_reduction <add>, %194, %cst_45 [1] : vector<2x32xf32> to vector<2xf32>
    %196 = vector.shape_cast %195 : vector<2xf32> to vector<2x1xf32>
    %c0_46 = arith.constant 0 : index
    %c0_47 = arith.constant 0 : index
    %197 = vector.load %arg7[%c0_46, %c0_47] : memref<1x1xf32, #tpu.memory_space<vmem>>, vector<1x1xf32>
    %198 = vector.broadcast %197 : vector<1x1xf32> to vector<2x1xf32>
    %199 = arith.addf %196, %198 : vector<2x1xf32>
    %200 = arith.negf %199 : vector<2x1xf32>
    %201 = math.exp %200 : vector<2x1xf32>
    %cst_48 = arith.constant 1.000000e+00 : f32
    %202 = vector.broadcast %cst_48 : f32 to vector<2x1xf32>
    %203 = arith.addf %202, %201 : vector<2x1xf32>
    %204 = arith.divf %202, %203 : vector<2x1xf32>
    %c0_49 = arith.constant 0 : index
    %c0_50 = arith.constant 0 : index
    %205 = vector.load %arg8[%c0_49, %c0_50] : memref<2x1xf32, #tpu.memory_space<vmem>>, vector<2x1xf32>
    tpu.vector_store %arg8[%c0_49, %c0_50], %204 {strides = array<i32>} : memref<2x1xf32, #tpu.memory_space<vmem>>, vector<2x1xf32>,
    return
  }
}

</mosaic_0001>

<bundles_post_ra>
// kernel: tpu_custom_call.1
= control target key start
LH: loop header
LB: loop body
LE: loop exit
PB: predicated region body
PF: predicated region fallthrough
CT: control target
= control target key end

     0   :  { %s1526_s0 = inlined_call_operand.vmem [shape: f32[16,16], index: 0, kind: input, shape index: {}]   ;;  %s1527_s1 = inlined_call_operand.vmem [shape: f32[16,256], index: 1, kind: input, shape index: {}]   ;;  %s1528_s2 = inlined_call_operand.hbm [shape: f32[64,256], index: 2, kind: input, shape index: {}]   ;;  %s1529_s3 = inlined_call_operand.vmem [shape: f32[1,256], index: 3, kind: input, shape index: {}]   ;;  %s1530_s4 = inlined_call_operand.vmem [shape: f32[64,32], index: 4, kind: input, shape index: {}]   ;;  %s1531_s5 = inlined_call_operand.vmem [shape: f32[1,32], index: 5, kind: input, shape index: {}]   ;;  %s1532_s6 = inlined_call_operand.vmem [shape: f32[1,32], index: 6, kind: input, shape index: {}]   ;;  %s1533_s7 = inlined_call_operand.<no memory space> [shape: f32[1,1], index: 7, kind: input, shape index: {}]   ;;  %s1534_s8 = inlined_call_operand.vmem [shape: f32[2,1], index: 8, kind: output, shape index: {0}]   ;;  %s1535_s9 = inlined_call_operand.hbm [shape: f32[16,32], index: 9, kind: output, shape index: {1}]  }
   0x1   :  { %v15_v0 = vstv %s1533_s7 }
   0x2   :  { %16 = vst [vmem:[#allocation3] sm:$0x1] %v15_v0 }
   0x3   :  { %17 = vsyncpa [#allocation5], 0 }
   0x4   :  { %18 = vsyncpa [#allocation6], 0  ;;  %s27_s13 = sshll.u32 %s1528_s2, 4  ;;  %s1205_s14 = smov [#allocation4]   ;;  %s28_s13 = int_to_ptr.hbm [resolvable:$true] %s27_s13 }
   0x5   :  { %s29_s15 = sshll.u32 %s1205_s14, 4  ;;  %s1206_s16 = smov 256   ;;  %s30_s15 = int_to_ptr.vmem [resolvable:$true] %s29_s15 }
   0x6   :  { %s1207_s17 = smov 16  }
   0x7   :  { %35 = dma.hbm_to_vmem [thread:$0]  %s28_s13, 2048, %s30_s15, [#allocation5], %s1206_s16, %s1206_s16, %s1207_s17  }
   0x8   :  { %1201 = dma.done.wait [#allocation5], 2048  }
   0x9   :  { %1202 = vsyncadd [#allocation5], 4294965248  ;;  %v111_v1 = vld [vmem:[#allocation4 + $0x68] sm:$0xff]  ;;  %v113_v2 = vld [vmem:[#allocation4 + $0x78] sm:$0xff]  ;;  %vm66_vm0 = vcmask 130048   ;;  %v1208_v34 = vmov 0  }
   0xa   :  { %v107_v3 = vld [vmem:[#allocation4 + $0x48] sm:$0xff]  ;;  %v1270_v4 = vpack.c.bf16 %v113_v2, %v111_v1  ;;  %v109_v5 = vld [vmem:[#allocation4 + $0x58] sm:$0xff]  ;;  %v110_v15 = vld [vmem:[#allocation4 + $0x60] sm:$0xff]  ;;  %s1209_s28 = smov 64   ;;  %vm210_vm9 = vcmask 517120   ;;  %vm122_vm10 = vcmask 523264  }
   0xb   :  { %v55_v6 = vld [vmem:[%s1527_s1 + $0x8] sm:$0xff]  ;;  %v57_v7 = vld [vmem:[%s1527_s1 + $0x18] sm:$0xff]  ;;  %v51_v9 = vld [vmem:[%s1526_s0] sm:$0xff]  ;;  %v1282_v10 = vpack.c.bf16 %v109_v5, %v107_v3  ;;  %s1211_s25 = smov [#allocation7]   ;;  %s1212_s27 = smov 128  }
   0xc   :  { %v59_v8 = vpack.c.bf16 %v57_v7, %v55_v6  ;;  %143 = vmatpush.bf16.msra.mxu3 %v1270_v4  ;;  %v103_v11 = vld [vmem:[#allocation4 + $0x28] sm:$0xff]  ;;  %v52_v12 = vld [vmem:[%s1526_s0 + $0x8] sm:$0xff]  ;;  %v106_v18 = vld [vmem:[#allocation4 + $0x40] sm:$0xff]  ;;  %s990_s0 = sshll.u32 %s1211_s25, 4  ;;  %s991_s0 = int_to_ptr.vmem [resolvable:$true] %s990_s0 }
   0xd   :  { %v105_v13 = vld [vmem:[#allocation4 + $0x38] sm:$0xff]  ;;  %v53_v14 = vpack.c.bf16 %v52_v12, %v51_v9  ;;  %v112_v16 = vld [vmem:[#allocation4 + $0x70] sm:$0xff]  ;;  %v99_v22 = vld [vmem:[#allocation4 + $0x8] sm:$0xff] }
   0xe   :  { %91 = vmatpush.bf16.msra.mxu1 %v59_v8  ;;  %v1287_v17 = vpack.c.bf16 %v112_v16, %v110_v15  ;;  %v108_v19 = vld [vmem:[#allocation4 + $0x50] sm:$0xff]  ;;  %v1294_v21 = vpack.c.bf16 %v105_v13, %v103_v11  ;;  %v56_v23 = vld [vmem:[%s1527_s1 + $0x10] sm:$0xff] }
   0xf   :  { %v54_v20 = vld [vmem:[%s1527_s1] sm:$0xff]  ;;  %v101_v24 = vld [vmem:[#allocation4 + $0x18] sm:$0xff]  ;;  %v1301_v25 = vpack.c.bf16 %v108_v19, %v106_v18  ;;  %v102_v27 = vld [vmem:[#allocation4 + $0x20] sm:$0xff] }
  0x10   :  { %144 = vmatpush.bf16.msra.mxu3 %v1282_v10  ;;  %130 = vmatpush.bf16.msra.mxu2 %v1287_v17  ;;  %v58_v26 = vpack.c.bf16 %v56_v23, %v54_v20  ;;  %v104_v28 = vld [vmem:[#allocation4 + $0x30] sm:$0xff]  ;;  %v1305_v29 = vpack.c.bf16 %v101_v24, %v99_v22  ;;  %v98_v31 = vld [vmem:[#allocation4] sm:$0xff] }
  0x11   :  { %1008 = vmatmul.msk.bf16.vlgmr.msra.gmra.mxu1 %vm66_vm0, %v53_v14  ;;  %v1309_v30 = vpack.c.bf16 %v104_v28, %v102_v27  ;;  %v100_v32 = vld [vmem:[#allocation4 + $0x10] sm:$0xff] }
  0x12   :  { %233 = vmatpush.bf16.msrb.mxu1 %v1270_v4  ;;  %77 = vmatpush.bf16.msra.mxu0 %v58_v26  ;;  %v1316_v33 = vpack.c.bf16 %v100_v32, %v98_v31  ;;  %v1349_v35 = vld [vmem:[%s1529_s3] sm:$0x3] }
  0x13   :  { %v63_v36 = vperm.slane %v1349_v35, 1  ;;  %v62_v45 = vperm.slane %v1349_v35, 0 }
  0x14   :  { %145 = vmatpush.bf16.msra.mxu3 %v1294_v21  ;;  %131 = vmatpush.bf16.msra.mxu2 %v1301_v25 }
  0x15   :  { %1007 = vmatmul.msk.bf16.vlgmr.msra.gmra.mxu0 %vm66_vm0, %v53_v14 }
  0x16   :  { %234 = vmatpush.bf16.msrb.mxu1 %v1282_v10  ;;  %220 = vmatpush.bf16.msrb.mxu0 %v1287_v17 }
  0x18   :  { %146 = vmatpush.bf16.msra.mxu3 %v1305_v29  ;;  %132 = vmatpush.bf16.msra.mxu2 %v1309_v30 }
  0x1a   :  { %235 = vmatpush.bf16.msrb.mxu1 %v1294_v21  ;;  %221 = vmatpush.bf16.msrb.mxu0 %v1301_v25 }
  0x1b   :  { %147 = vmatmul.bf16.vlgmr.msra.gmra.mxu3 %v1208_v34 }
  0x1c   :  { %334 = vmatpush.bf16.msrb.mxu3 %v1270_v4  ;;  %133 = vmatpush.bf16.msra.mxu2 %v1316_v33 }
  0x1e   :  { %236 = vmatpush.bf16.msrb.mxu1 %v1305_v29  ;;  %222 = vmatpush.bf16.msrb.mxu0 %v1309_v30 }
  0x1f   :  { %134 = vmatmul.bf16.vlgmr.msra.gmra.mxu2 %v1208_v34 }
  0x20   :  { %335 = vmatpush.bf16.msrb.mxu3 %v1282_v10  ;;  %321 = vmatpush.bf16.msrb.mxu2 %v1287_v17 }
  0x22   :  { %435 = vmatpush.bf16.msra.mxu1 %v1270_v4  ;;  %223 = vmatpush.bf16.msrb.mxu0 %v1316_v33 }
  0x24   :  { %336 = vmatpush.bf16.msrb.mxu3 %v1294_v21  ;;  %322 = vmatpush.bf16.msrb.mxu2 %v1301_v25 }
  0x26   :  { %436 = vmatpush.bf16.msra.mxu1 %v1282_v10  ;;  %422 = vmatpush.bf16.msra.mxu0 %v1287_v17 }
  0x28   :  { %337 = vmatpush.bf16.msrb.mxu3 %v1305_v29  ;;  %323 = vmatpush.bf16.msrb.mxu2 %v1309_v30 }
  0x2a   :  { %437 = vmatpush.bf16.msra.mxu1 %v1294_v21  ;;  %423 = vmatpush.bf16.msra.mxu0 %v1301_v25 }
  0x2c   :  { %536 = vmatpush.bf16.msra.mxu3 %v1270_v4  ;;  %324 = vmatpush.bf16.msrb.mxu2 %v1316_v33 }
  0x2e   :  { %438 = vmatpush.bf16.msra.mxu1 %v1305_v29  ;;  %424 = vmatpush.bf16.msra.mxu0 %v1309_v30 }
  0x30   :  { %537 = vmatpush.bf16.msra.mxu3 %v1282_v10  ;;  %523 = vmatpush.bf16.msra.mxu2 %v1287_v17 }
  0x32   :  { %425 = vmatpush.bf16.msra.mxu0 %v1316_v33 }
  0x34   :  { %538 = vmatpush.bf16.msra.mxu3 %v1294_v21  ;;  %524 = vmatpush.bf16.msra.mxu2 %v1301_v25 }
  0x38   :  { %539 = vmatpush.bf16.msra.mxu3 %v1305_v29  ;;  %525 = vmatpush.bf16.msra.mxu2 %v1309_v30 }
  0x3c   :  { %526 = vmatpush.bf16.msra.mxu2 %v1316_v33 }
  0x8e   :  { %v93_v37 = vpop.f32.mrf.mxu1 }
  0x8f   :  { %v1354_v38 = vadd.f32 %v93_v37, %v63_v36 }
  0x92   :  { %v79_v46 = vpop.f32.mrf.mxu0 }
  0x93   :  { %v1361_v47 = vadd.f32 %v79_v46, %v62_v45 }
  0x96   :  { %v1380_v24 = vpop.f32.mrf.mxu1 }
  0x9a   :  { %v1382_v26 = vpop.f32.mrf.mxu0 }
  0x9e   :  { %v148_v39 = vpop.f32.mrf.mxu3 }
  0x9f   :  { %v153_v40 = vadd.f32 %v148_v39, %v1354_v38 }
  0xa1   :  { %1053 = vtanh.f32 %v153_v40  ;;  %v1010_v5 = vmul.f32 -1.442695, %v153_v40 }
  0xa2   :  { %v135_v41 = vpop.f32.mrf.mxu2 }
  0xa3   :  { %v152_v48 = vadd.f32 %v135_v41, %v1361_v47 }
  0xa5   :  { %v1009_v49 = vmul.f32 -1.442695, %v152_v48 }
  0xa6   :  { %v150_v42 = vpop.f32.mrf.mxu3 }
  0xa7   :  { %v1054_v43 = vpop.eup %1053  ;;  %1055 = vpow2.f32 %v1009_v49 }
  0xa8   :  { %195 = vrot.lane.b32.xlu0 %v1054_v43, %s1209_s28 }
  0xaa   :  { %v137_v44 = vpop.f32.mrf.mxu2 }
  0xad   :  { %v1056_v50 = vpop.eup %1055 }
  0xae   :  { %v160_v51 = vadd.f32 1.0, %v1056_v50 }
  0xb0   :  { %1057 = vrcp.f32 %v160_v51  ;;  %vm167_vm1 = vweird.f32 %v160_v51  ;;  %v173_v56 = vand.u32 2147483648, %v160_v51  ;;  %v171_v58 = vand.u32 2147483647, %v160_v51 }
  0xb2   :  { %v174_v59 = vor.u32 1.1754944e-38, %v173_v56  ;;  %vm172_vm4 = vcmp.eq.f32.partialorder %v171_v58, 8.507059e+37 }
  0xb6   :  { %v1058_v52 = vpop.eup %1057 }
  0xb7   :  { %v163_v53 = vmul.f32 %v1058_v52, %v160_v51  ;;  %vm168_vm2 = vweird.f32 %v1058_v52 }
  0xb8   :  { %vm169_vm3 = vmor %vm167_vm1, %vm168_vm2 }
  0xb9   :  { %v164_v54 = vsub.f32 1.0, %v163_v53 }
  0xbb   :  { %v165_v55 = vmul.f32 %v1058_v52, %v164_v54 }
  0xbd   :  { %v166_v57 = vadd.f32 %v1058_v52, %v165_v55 }
  0xbf   :  { %v170_v60 = vsel %vm169_vm3, %v1058_v52, %v166_v57  ;;  %vm309_vm3 = vcmask 519170  }
  0xc0   :  { %v175_v62 = vsel %vm172_vm4, %v174_v59, %v170_v60 }
  0xc1   :  { %v193_v0 = vmul.f32 0.0, %v175_v62 }
 0x11a   :  { %v196_v61 = vpop.permute.xlu0 %195 }
 0x11b   :  { %v198_v63 = vmul.f32 %v196_v61, %v175_v62 }
 0x11d   :  { %200 = vrot.lane.b32.xlu0 %v198_v63, %s1209_s28 }
 0x18f   :  { %v201_v1 = vpop.permute.xlu0 %200 }
 0x190   :  { %v1365_v2 = vadd.f32 %v201_v1, %v193_v0 }
 0x192   :  { %1059 = vtanh.f32 %v1365_v2  ;;  %v290_v59 = vrot.slane %v1365_v2, 6 }
 0x193   :  { %1061 = vpow2.f32 %v1010_v5 }
 0x198   :  { %v1060_v3 = vpop.eup %1059 }
 0x199   :  { %206 = vrot.lane.b32.xlu1 %v1060_v3, %s1209_s28  ;;  %v1062_v6 = vpop.eup %1061 }
 0x19a   :  { %v161_v7 = vadd.f32 1.0, %v1062_v6 }
 0x19c   :  { %1063 = vrcp.f32 %v161_v7  ;;  %v188_v14 = vand.u32 2147483648, %v161_v7  ;;  %vm182_vm6 = vweird.f32 %v161_v7  ;;  %v186_v15 = vand.u32 2147483647, %v161_v7 }
 0x19e   :  { %v189_v18 = vor.u32 1.1754944e-38, %v188_v14  ;;  %vm187_vm8 = vcmp.eq.f32.partialorder %v186_v15, 8.507059e+37 }
 0x1a2   :  { %v1064_v8 = vpop.eup %1063 }
 0x1a3   :  { %v178_v9 = vmul.f32 %v1064_v8, %v161_v7  ;;  %vm183_vm5 = vweird.f32 %v1064_v8 }
 0x1a4   :  { %vm184_vm7 = vmor %vm182_vm6, %vm183_vm5 }
 0x1a5   :  { %v179_v11 = vsub.f32 1.0, %v178_v9 }
 0x1a7   :  { %v180_v12 = vmul.f32 %v1064_v8, %v179_v11 }
 0x1a9   :  { %v181_v13 = vadd.f32 %v1064_v8, %v180_v12 }
 0x1ab   :  { %v185_v16 = vsel %vm184_vm7, %v1064_v8, %v181_v13 }
 0x1ac   :  { %v190_v19 = vsel %vm187_vm8, %v189_v18, %v185_v16 }
 0x20b   :  { %v207_v20 = vpop.permute.xlu1 %206 }
 0x20c   :  { %v209_v22 = vmul.f32 %v207_v20, %v190_v19 }
 0x20e   :  { %211 = vst.msk [vmem:[#allocation2] sm:$0x3] %vm210_vm9, %v209_v22  ;;  %v212_v23 = vpack.c.bf16 %v209_v22, %v209_v22 }
 0x210   :  { %1011 = vmatmul.msk.bf16.vlgmr.msrb.gmra.mxu0 %vm122_vm10, %v212_v23  ;;  %1012 = vmatmul.msk.bf16.vlgmr.msrb.gmra.mxu1 %vm122_vm10, %v212_v23 }
 0x211   :  { %628 = vmatpush.bf16.msrb.mxu1 %v1270_v4  ;;  %615 = vmatpush.bf16.msrb.mxu0 %v1287_v17 }
 0x215   :  { %629 = vmatpush.bf16.msrb.mxu1 %v1282_v10  ;;  %616 = vmatpush.bf16.msrb.mxu0 %v1301_v25 }
 0x219   :  { %630 = vmatpush.bf16.msrb.mxu1 %v1294_v21  ;;  %617 = vmatpush.bf16.msrb.mxu0 %v1309_v30 }
 0x21d   :  { %631 = vmatpush.bf16.msrb.mxu1 %v1305_v29  ;;  %618 = vmatpush.bf16.msrb.mxu0 %v1316_v33 }
 0x28d   :  { %v225_v27 = vpop.f32.mrf.mxu0  ;;  %v238_v28 = vpop.f32.mrf.mxu1 }
 0x28e   :  { %v245_v31 = vrot.slane %v238_v28, 6  ;;  %v244_v40 = vrot.slane %v225_v27, 6 }
 0x290   :  { %v249_v32 = vadd.f32 %v245_v31, %v1354_v38  ;;  %v248_v41 = vadd.f32 %v244_v40, %v1361_v47 }
 0x292   :  { %1065 = vtanh.f32 %v249_v32  ;;  %v1013_v42 = vmul.f32 -1.442695, %v248_v41  ;;  %v1014_v0 = vmul.f32 -1.442695, %v249_v32 }
 0x294   :  { %1067 = vpow2.f32 %v1013_v42 }
 0x295   :  { %v227_v34 = vpop.f32.mrf.mxu0  ;;  %v240_v37 = vpop.f32.mrf.mxu1 }
 0x298   :  { %v1066_v39 = vpop.eup %1065 }
 0x299   :  { %294 = vrot.lane.b32.xlu1 %v1066_v39, %s1209_s28 }
 0x29a   :  { %v1068_v43 = vpop.eup %1067 }
 0x29b   :  { %v256_v44 = vadd.f32 1.0, %v1068_v43 }
 0x29d   :  { %1069 = vrcp.f32 %v256_v44  ;;  %v269_v52 = vand.u32 2147483648, %v256_v44  ;;  %vm263_vm12 = vweird.f32 %v256_v44  ;;  %v267_v53 = vand.u32 2147483647, %v256_v44 }
 0x29f   :  { %v270_v55 = vor.u32 1.1754944e-38, %v269_v52  ;;  %vm268_vm14 = vcmp.eq.f32.partialorder %v267_v53, 8.507059e+37 }
 0x2a3   :  { %v1070_v46 = vpop.eup %1069 }
 0x2a4   :  { %v259_v48 = vmul.f32 %v1070_v46, %v256_v44  ;;  %vm264_vm11 = vweird.f32 %v1070_v46 }
 0x2a5   :  { %vm265_vm13 = vmor %vm263_vm12, %vm264_vm11 }
 0x2a6   :  { %v260_v49 = vsub.f32 1.0, %v259_v48 }
 0x2a8   :  { %v261_v50 = vmul.f32 %v1070_v46, %v260_v49 }
 0x2aa   :  { %v262_v51 = vadd.f32 %v1070_v46, %v261_v50 }
 0x2ac   :  { %v266_v54 = vsel %vm265_vm13, %v1070_v46, %v262_v51 }
 0x2ad   :  { %v271_v57 = vsel %vm268_vm14, %v270_v55, %v266_v54  ;;  %vm410_vm14 = vcmask 521220  }
 0x2ae   :  { %v292_v60 = vmul.f32 %v290_v59, %v271_v57 }
 0x30b   :  { %v295_v56 = vpop.permute.xlu1 %294 }
 0x30c   :  { %v297_v58 = vmul.f32 %v295_v56, %v271_v57 }
 0x30e   :  { %299 = vrot.lane.b32.xlu2 %v297_v58, %s1209_s28 }
 0x368   :  { %v300_v61 = vpop.permute.xlu2 %299 }
 0x369   :  { %v1389_v62 = vadd.f32 %v300_v61, %v292_v60 }
 0x36b   :  { %1071 = vtanh.f32 %v1389_v62  ;;  %v391_v56 = vrot.slane %v1389_v62, 6 }
 0x36c   :  { %1073 = vpow2.f32 %v1014_v0 }
 0x371   :  { %v1072_v63 = vpop.eup %1071 }
 0x372   :  { %305 = vrot.lane.b32.xlu2 %v1072_v63, %s1209_s28  ;;  %v1074_v1 = vpop.eup %1073 }
 0x373   :  { %v257_v3 = vadd.f32 1.0, %v1074_v1 }
 0x375   :  { %1075 = vrcp.f32 %v257_v3  ;;  %v284_v2 = vand.u32 2147483648, %v257_v3  ;;  %vm278_vm0 = vweird.f32 %v257_v3  ;;  %v282_v11 = vand.u32 2147483647, %v257_v3 }
 0x377   :  { %v285_v13 = vor.u32 1.1754944e-38, %v284_v2  ;;  %vm283_vm2 = vcmp.eq.f32.partialorder %v282_v11, 8.507059e+37 }
 0x37b   :  { %v1076_v5 = vpop.eup %1075 }
 0x37c   :  { %v274_v6 = vmul.f32 %v1076_v5, %v257_v3  ;;  %vm279_vm15 = vweird.f32 %v1076_v5 }
 0x37d   :  { %vm280_vm1 = vmor %vm278_vm0, %vm279_vm15 }
 0x37e   :  { %v275_v7 = vsub.f32 1.0, %v274_v6 }
 0x380   :  { %v276_v8 = vmul.f32 %v1076_v5, %v275_v7 }
 0x382   :  { %v277_v9 = vadd.f32 %v1076_v5, %v276_v8 }
 0x384   :  { %v281_v12 = vsel %vm280_vm1, %v1076_v5, %v277_v9 }
 0x385   :  { %v286_v14 = vsel %vm283_vm2, %v285_v13, %v281_v12 }
 0x3cc   :  { %v306_v15 = vpop.permute.xlu2 %305 }
 0x3cd   :  { %v308_v16 = vmul.f32 %v306_v15, %v286_v14 }
 0x3cf   :  { %310 = vst.msk [vmem:[#allocation2] sm:$0xc] %vm309_vm3, %v308_v16  ;;  %v311_v18 = vpack.c.bf16 %v308_v16, %v308_v16 }
 0x3d1   :  { %v313_v19 = vrot.slane %v311_v18, 1 }
 0x3d3   :  { %1015 = vmatmul.msk.bf16.vlgmr.msrb.gmra.mxu2 %vm122_vm10, %v313_v19  ;;  %1016 = vmatmul.msk.bf16.vlgmr.msrb.gmra.mxu3 %vm122_vm10, %v313_v19 }
 0x3d4   :  { %728 = vmatpush.bf16.msrb.mxu3 %v1270_v4  ;;  %715 = vmatpush.bf16.msrb.mxu2 %v1287_v17 }
 0x3d8   :  { %729 = vmatpush.bf16.msrb.mxu3 %v1282_v10  ;;  %716 = vmatpush.bf16.msrb.mxu2 %v1301_v25 }
 0x3dc   :  { %730 = vmatpush.bf16.msrb.mxu3 %v1294_v21  ;;  %717 = vmatpush.bf16.msrb.mxu2 %v1309_v30 }
 0x3e0   :  { %731 = vmatpush.bf16.msrb.mxu3 %v1305_v29  ;;  %718 = vmatpush.bf16.msrb.mxu2 %v1316_v33 }
 0x456   :  { %v326_v20 = vpop.f32.mrf.mxu2  ;;  %v339_v22 = vpop.f32.mrf.mxu3 }
 0x457   :  { %v346_v23 = vrot.slane %v339_v22, 4  ;;  %v345_v34 = vrot.slane %v326_v20, 4 }
 0x459   :  { %v350_v27 = vadd.f32 %v346_v23, %v1354_v38  ;;  %v349_v37 = vadd.f32 %v345_v34, %v1361_v47 }
 0x45b   :  { %1077 = vtanh.f32 %v350_v27  ;;  %v1017_v39 = vmul.f32 -1.442695, %v349_v37  ;;  %v1018_v61 = vmul.f32 -1.442695, %v350_v27 }
 0x45d   :  { %1079 = vpow2.f32 %v1017_v39 }
 0x45e   :  { %v328_v28 = vpop.f32.mrf.mxu2  ;;  %v341_v31 = vpop.f32.mrf.mxu3 }
 0x461   :  { %v1078_v32 = vpop.eup %1077 }
 0x462   :  { %395 = vrot.lane.b32.xlu0 %v1078_v32, %s1209_s28 }
 0x463   :  { %v1080_v40 = vpop.eup %1079 }
 0x464   :  { %v357_v41 = vadd.f32 1.0, %v1080_v40 }
 0x466   :  { %1081 = vrcp.f32 %v357_v41  ;;  %v370_v49 = vand.u32 2147483648, %v357_v41  ;;  %vm364_vm5 = vweird.f32 %v357_v41  ;;  %v368_v50 = vand.u32 2147483647, %v357_v41 }
 0x468   :  { %v371_v52 = vor.u32 1.1754944e-38, %v370_v49  ;;  %vm369_vm7 = vcmp.eq.f32.partialorder %v368_v50, 8.507059e+37 }
 0x46c   :  { %v1082_v42 = vpop.eup %1081 }
 0x46d   :  { %v360_v43 = vmul.f32 %v1082_v42, %v357_v41  ;;  %vm365_vm4 = vweird.f32 %v1082_v42 }
 0x46e   :  { %vm366_vm6 = vmor %vm364_vm5, %vm365_vm4 }
 0x46f   :  { %v361_v44 = vsub.f32 1.0, %v360_v43 }
 0x471   :  { %v362_v46 = vmul.f32 %v1082_v42, %v361_v44 }
 0x473   :  { %v363_v48 = vadd.f32 %v1082_v42, %v362_v46 }
 0x475   :  { %v367_v51 = vsel %vm366_vm6, %v1082_v42, %v363_v48 }
 0x476   :  { %v372_v54 = vsel %vm369_vm7, %v371_v52, %v367_v51 }
 0x477   :  { %v393_v57 = vmul.f32 %v391_v56, %v372_v54 }
 0x4d4   :  { %v396_v53 = vpop.permute.xlu0 %395 }
 0x4d5   :  { %v398_v55 = vmul.f32 %v396_v53, %v372_v54 }
 0x4d7   :  { %400 = vrot.lane.b32.xlu1 %v398_v55, %s1209_s28 }
 0x549   :  { %v401_v58 = vpop.permute.xlu1 %400 }
 0x54a   :  { %v1409_v59 = vadd.f32 %v401_v58, %v393_v57 }
 0x54c   :  { %1083 = vtanh.f32 %v1409_v59  ;;  %v492_v41 = vrot.slane %v1409_v59, 6 }
 0x54d   :  { %1085 = vpow2.f32 %v1018_v61 }
 0x552   :  { %v1084_v60 = vpop.eup %1083 }
 0x553   :  { %406 = vrot.lane.b32.xlu2 %v1084_v60, %s1209_s28  ;;  %v1086_v63 = vpop.eup %1085 }
 0x554   :  { %v358_v0 = vadd.f32 1.0, %v1086_v63 }
 0x556   :  { %1087 = vrcp.f32 %v358_v0  ;;  %v385_v62 = vand.u32 2147483648, %v358_v0  ;;  %vm379_vm11 = vweird.f32 %v358_v0  ;;  %v383_v8 = vand.u32 2147483647, %v358_v0 }
 0x558   :  { %v386_v2 = vor.u32 1.1754944e-38, %v385_v62  ;;  %vm384_vm13 = vcmp.eq.f32.partialorder %v383_v8, 8.507059e+37 }
 0x55c   :  { %v1088_v1 = vpop.eup %1087 }
 0x55d   :  { %v375_v3 = vmul.f32 %v1088_v1, %v358_v0  ;;  %vm380_vm8 = vweird.f32 %v1088_v1 }
 0x55e   :  { %vm381_vm12 = vmor %vm379_vm11, %vm380_vm8  ;;  %vm511_vm8 = vcmask 523270  }
 0x55f   :  { %v376_v5 = vsub.f32 1.0, %v375_v3  ;;  %v1439_v3 = vadd.f32 %v1380_v24, %v63_v36 }
 0x561   :  { %v377_v6 = vmul.f32 %v1088_v1, %v376_v5 }
 0x563   :  { %v378_v7 = vadd.f32 %v1088_v1, %v377_v6 }
 0x565   :  { %v382_v9 = vsel %vm381_vm12, %v1088_v1, %v378_v7 }
 0x566   :  { %v387_v11 = vsel %vm384_vm13, %v386_v2, %v382_v9  ;;  %v1446_v2 = vadd.f32 %v1382_v26, %v62_v45 }
 0x5ad   :  { %v407_v12 = vpop.permute.xlu2 %406 }
 0x5ae   :  { %v409_v13 = vmul.f32 %v407_v12, %v387_v11 }
 0x5b0   :  { %411 = vst.msk [vmem:[#allocation2] sm:$0x30] %vm410_vm14, %v409_v13  ;;  %v412_v14 = vpack.c.bf16 %v409_v13, %v409_v13 }
 0x5b2   :  { %v414_v15 = vrot.slane %v412_v14, 2 }
 0x5b4   :  { %1019 = vmatmul.msk.bf16.vlgmr.msra.gmra.mxu0 %vm122_vm10, %v414_v15  ;;  %1020 = vmatmul.msk.bf16.vlgmr.msra.gmra.mxu1 %vm122_vm10, %v414_v15 }
 0x5b5   :  { %828 = vmatpush.bf16.msra.mxu1 %v1270_v4  ;;  %815 = vmatpush.bf16.msra.mxu0 %v1287_v17 }
 0x5b9   :  { %829 = vmatpush.bf16.msra.mxu1 %v1282_v10  ;;  %816 = vmatpush.bf16.msra.mxu0 %v1301_v25 }
 0x5bd   :  { %830 = vmatpush.bf16.msra.mxu1 %v1294_v21  ;;  %817 = vmatpush.bf16.msra.mxu0 %v1309_v30 }
 0x5c1   :  { %831 = vmatpush.bf16.msra.mxu1 %v1305_v29  ;;  %818 = vmatpush.bf16.msra.mxu0 %v1316_v33 }
 0x631   :  { %v427_v16 = vpop.f32.mrf.mxu0  ;;  %v440_v18 = vpop.f32.mrf.mxu1 }
 0x632   :  { %v447_v19 = vrot.slane %v440_v18, 2  ;;  %v446_v10 = vrot.slane %v427_v16, 2 }
 0x634   :  { %v451_v20 = vadd.f32 %v447_v19, %v1354_v38  ;;  %v450_v21 = vadd.f32 %v446_v10, %v1361_v47 }
 0x636   :  { %1089 = vtanh.f32 %v451_v20  ;;  %v1021_v25 = vmul.f32 -1.442695, %v450_v21  ;;  %v1022_v48 = vmul.f32 -1.442695, %v451_v20 }
 0x638   :  { %1091 = vpow2.f32 %v1021_v25 }
 0x639   :  { %v429_v4 = vpop.f32.mrf.mxu0  ;;  %v442_v17 = vpop.f32.mrf.mxu1 }
 0x63c   :  { %v1090_v22 = vpop.eup %1089 }
 0x63d   :  { %496 = vrot.lane.b32.xlu0 %v1090_v22, %s1209_s28 }
 0x63e   :  { %v1092_v30 = vpop.eup %1091 }
 0x63f   :  { %v458_v29 = vadd.f32 1.0, %v1092_v30 }
 0x641   :  { %1093 = vrcp.f32 %v458_v29  ;;  %v471_v38 = vand.u32 2147483648, %v458_v29  ;;  %vm465_vm0 = vweird.f32 %v458_v29  ;;  %v469_v32 = vand.u32 2147483647, %v458_v29 }
 0x643   :  { %v472_v37 = vor.u32 1.1754944e-38, %v471_v38  ;;  %vm470_vm2 = vcmp.eq.f32.partialorder %v469_v32, 8.507059e+37 }
 0x647   :  { %v1094_v33 = vpop.eup %1093 }
 0x648   :  { %v461_v23 = vmul.f32 %v1094_v33, %v458_v29  ;;  %vm466_vm15 = vweird.f32 %v1094_v33 }
 0x649   :  { %vm467_vm1 = vmor %vm465_vm0, %vm466_vm15 }
 0x64a   :  { %v462_v27 = vsub.f32 1.0, %v461_v23 }
 0x64c   :  { %v463_v28 = vmul.f32 %v1094_v33, %v462_v27 }
 0x64e   :  { %v464_v31 = vadd.f32 %v1094_v33, %v463_v28 }
 0x650   :  { %v468_v34 = vsel %vm467_vm1, %v1094_v33, %v464_v31 }
 0x651   :  { %v473_v47 = vsel %vm470_vm2, %v472_v37, %v468_v34 }
 0x652   :  { %v494_v42 = vmul.f32 %v492_v41, %v473_v47 }
 0x6af   :  { %v497_v39 = vpop.permute.xlu0 %496 }
 0x6b0   :  { %v499_v40 = vmul.f32 %v497_v39, %v473_v47 }
 0x6b2   :  { %501 = vrot.lane.b32.xlu1 %v499_v40, %s1209_s28 }
 0x724   :  { %v502_v43 = vpop.permute.xlu1 %501 }
 0x725   :  { %v1429_v44 = vadd.f32 %v502_v43, %v494_v42 }
 0x727   :  { %1095 = vtanh.f32 %v1429_v44  ;;  %v587_v22 = vrot.slane %v1429_v44, 6 }
 0x728   :  { %1097 = vpow2.f32 %v1022_v48 }
 0x72d   :  { %v1096_v46 = vpop.eup %1095 }
 0x72e   :  { %507 = vrot.lane.b32.xlu2 %v1096_v46, %s1209_s28  ;;  %v1098_v49 = vpop.eup %1097 }
 0x72f   :  { %v459_v50 = vadd.f32 1.0, %v1098_v49 }
 0x731   :  { %1099 = vrcp.f32 %v459_v50  ;;  %v486_v56 = vand.u32 2147483648, %v459_v50  ;;  %vm480_vm5 = vweird.f32 %v459_v50  ;;  %v484_v57 = vand.u32 2147483647, %v459_v50 }
 0x733   :  { %v487_v59 = vor.u32 1.1754944e-38, %v486_v56  ;;  %vm485_vm7 = vcmp.eq.f32.partialorder %v484_v57, 8.507059e+37 }
 0x737   :  { %v1100_v51 = vpop.eup %1099 }
 0x738   :  { %v476_v52 = vmul.f32 %v1100_v51, %v459_v50  ;;  %vm481_vm4 = vweird.f32 %v1100_v51 }
 0x739   :  { %vm482_vm6 = vmor %vm480_vm5, %vm481_vm4 }
 0x73a   :  { %v477_v53 = vsub.f32 1.0, %v476_v52 }
 0x73c   :  { %v478_v54 = vmul.f32 %v1100_v51, %v477_v53 }
 0x73e   :  { %v479_v55 = vadd.f32 %v1100_v51, %v478_v54 }
 0x740   :  { %v483_v58 = vsel %vm482_vm6, %v1100_v51, %v479_v55 }
 0x741   :  { %v488_v60 = vsel %vm485_vm7, %v487_v59, %v483_v58 }
 0x788   :  { %v508_v61 = vpop.permute.xlu2 %507 }
 0x789   :  { %v510_v63 = vmul.f32 %v508_v61, %v488_v60 }
 0x78b   :  { %512 = vst.msk [vmem:[#allocation2] sm:$0xc0] %vm511_vm8, %v510_v63  ;;  %v513_v0 = vpack.c.bf16 %v510_v63, %v510_v63 }
 0x78d   :  { %v515_v1 = vrot.slane %v513_v0, 3 }
 0x78f   :  { %1023 = vmatmul.msk.bf16.vlgmr.msra.gmra.mxu2 %vm122_vm10, %v515_v1  ;;  %1024 = vmatmul.msk.bf16.vlgmr.msra.gmra.mxu3 %vm122_vm10, %v515_v1 }
 0x812   :  { %v528_v5 = vpop.f32.mrf.mxu2  ;;  %v541_v6 = vpop.f32.mrf.mxu3 }
 0x813   :  { %v546_v7 = vadd.f32 %v541_v6, %v1439_v3  ;;  %v545_v11 = vadd.f32 %v528_v5, %v1446_v2 }
 0x815   :  { %1101 = vtanh.f32 %v546_v7  ;;  %v1025_v12 = vmul.f32 -1.442695, %v545_v11  ;;  %v1026_v29 = vmul.f32 -1.442695, %v546_v7 }
 0x817   :  { %1103 = vpow2.f32 %v1025_v12 }
 0x81a   :  { %v530_v62 = vpop.f32.mrf.mxu2  ;;  %v543_v8 = vpop.f32.mrf.mxu3 }
 0x81b   :  { %v1102_v9 = vpop.eup %1101 }
 0x81c   :  { %591 = vrot.lane.b32.xlu0 %v1102_v9, %s1209_s28 }
 0x81d   :  { %v1104_v36 = vpop.eup %1103 }
 0x81e   :  { %v553_v24 = vadd.f32 1.0, %v1104_v36 }
 0x820   :  { %1105 = vrcp.f32 %v553_v24  ;;  %v566_v19 = vand.u32 2147483648, %v553_v24  ;;  %vm560_vm12 = vweird.f32 %v553_v24  ;;  %v564_v20 = vand.u32 2147483647, %v553_v24 }
 0x822   :  { %v567_v45 = vor.u32 1.1754944e-38, %v566_v19  ;;  %vm565_vm15 = vcmp.eq.f32.partialorder %v564_v20, 8.507059e+37 }
 0x826   :  { %v1106_v13 = vpop.eup %1105 }
 0x827   :  { %v556_v14 = vmul.f32 %v1106_v13, %v553_v24  ;;  %vm561_vm11 = vweird.f32 %v1106_v13 }
 0x828   :  { %vm562_vm13 = vmor %vm560_vm12, %vm561_vm11 }
 0x829   :  { %v557_v15 = vsub.f32 1.0, %v556_v14 }
 0x82b   :  { %v558_v16 = vmul.f32 %v1106_v13, %v557_v15 }
 0x82d   :  { %v559_v18 = vadd.f32 %v1106_v13, %v558_v16 }
 0x82f   :  { %v563_v35 = vsel %vm562_vm13, %v1106_v13, %v559_v18 }
 0x830   :  { %v568_v4 = vsel %vm565_vm15, %v567_v45, %v563_v35 }
 0x831   :  { %v589_v10 = vmul.f32 %v587_v22, %v568_v4 }
 0x88e   :  { %v592_v26 = vpop.permute.xlu0 %591 }
 0x88f   :  { %v594_v17 = vmul.f32 %v592_v26, %v568_v4 }
 0x891   :  { %596 = vrot.lane.b32.xlu1 %v594_v17, %s1209_s28 }
 0x903   :  { %v597_v21 = vpop.permute.xlu1 %596 }
 0x904   :  { %v1451_v25 = vadd.f32 %v597_v21, %v589_v10 }
 0x906   :  { %1107 = vtanh.f32 %v1451_v25  ;;  %v685_v9 = vrot.slane %v1451_v25, 6 }
 0x907   :  { %1109 = vpow2.f32 %v1026_v29 }
 0x90c   :  { %v1108_v30 = vpop.eup %1107 }
 0x90d   :  { %602 = vrot.lane.b32.xlu2 %v1108_v30, %s1209_s28  ;;  %v1110_v33 = vpop.eup %1109 }
 0x90e   :  { %v554_v23 = vadd.f32 1.0, %v1110_v33 }
 0x910   :  { %1111 = vrcp.f32 %v554_v23  ;;  %v581_v34 = vand.u32 2147483648, %v554_v23  ;;  %vm575_vm1 = vweird.f32 %v554_v23  ;;  %v579_v37 = vand.u32 2147483647, %v554_v23 }
 0x912   :  { %v582_v47 = vor.u32 1.1754944e-38, %v581_v34  ;;  %vm580_vm4 = vcmp.eq.f32.partialorder %v579_v37, 8.507059e+37 }
 0x916   :  { %v1112_v27 = vpop.eup %1111 }
 0x917   :  { %v571_v28 = vmul.f32 %v1112_v27, %v554_v23  ;;  %vm576_vm0 = vweird.f32 %v1112_v27 }
 0x918   :  { %vm577_vm2 = vmor %vm575_vm1, %vm576_vm0 }
 0x919   :  { %v572_v31 = vsub.f32 1.0, %v571_v28 }
 0x91b   :  { %v573_v38 = vmul.f32 %v1112_v27, %v572_v31 }
 0x91d   :  { %v574_v32 = vadd.f32 %v1112_v27, %v573_v38 }
 0x91f   :  { %v578_v39 = vsel %vm577_vm2, %v1112_v27, %v574_v32 }
 0x920   :  { %v583_v40 = vsel %vm580_vm4, %v582_v47, %v578_v39 }
 0x967   :  { %v603_v41 = vpop.permute.xlu2 %602 }
 0x968   :  { %v605_v42 = vmul.f32 %v603_v41, %v583_v40 }
 0x96a   :  { %606 = vst.msk [vmem:[#allocation2 + $0x8] sm:$0x3] %vm210_vm9, %v605_v42  ;;  %v607_v43 = vpack.c.bf16 %v605_v42, %v605_v42 }
 0x96c   :  { %1027 = vmatmul.msk.bf16.vlgmr.msrb.gmra.mxu0 %vm122_vm10, %v607_v43  ;;  %1028 = vmatmul.msk.bf16.vlgmr.msrb.gmra.mxu1 %vm122_vm10, %v607_v43 }
 0x9e9   :  { %v620_v44 = vpop.f32.mrf.mxu0  ;;  %v633_v46 = vpop.f32.mrf.mxu1 }
 0x9ea   :  { %v640_v48 = vrot.slane %v633_v46, 6  ;;  %v639_v53 = vrot.slane %v620_v44, 6 }
 0x9ec   :  { %v644_v49 = vadd.f32 %v640_v48, %v1439_v3  ;;  %v643_v54 = vadd.f32 %v639_v53, %v1446_v2 }
 0x9ee   :  { %1113 = vtanh.f32 %v644_v49  ;;  %v1029_v55 = vmul.f32 -1.442695, %v643_v54  ;;  %v1030_v13 = vmul.f32 -1.442695, %v644_v49 }
 0x9f0   :  { %1115 = vpow2.f32 %v1029_v55 }
 0x9f1   :  { %v622_v50 = vpop.f32.mrf.mxu0  ;;  %v635_v51 = vpop.f32.mrf.mxu1 }
 0x9f4   :  { %v1114_v52 = vpop.eup %1113 }
 0x9f5   :  { %689 = vrot.lane.b32.xlu0 %v1114_v52, %s1209_s28 }
 0x9f6   :  { %v1116_v56 = vpop.eup %1115 }
 0x9f7   :  { %v651_v57 = vadd.f32 1.0, %v1116_v56 }
 0x9f9   :  { %1117 = vrcp.f32 %v651_v57  ;;  %v664_v0 = vand.u32 2147483648, %v651_v57  ;;  %vm658_vm5 = vweird.f32 %v651_v57  ;;  %v662_v1 = vand.u32 2147483647, %v651_v57 }
 0x9fb   :  { %v665_v6 = vor.u32 1.1754944e-38, %v664_v0  ;;  %vm663_vm7 = vcmp.eq.f32.partialorder %v662_v1, 8.507059e+37 }
 0x9ff   :  { %v1118_v58 = vpop.eup %1117 }
 0xa00   :  { %v654_v59 = vmul.f32 %v1118_v58, %v651_v57  ;;  %vm659_vm9 = vweird.f32 %v1118_v58 }
 0xa01   :  { %vm660_vm6 = vmor %vm658_vm5, %vm659_vm9 }
 0xa02   :  { %v655_v60 = vsub.f32 1.0, %v654_v59 }
 0xa04   :  { %v656_v61 = vmul.f32 %v1118_v58, %v655_v60 }
 0xa06   :  { %v657_v63 = vadd.f32 %v1118_v58, %v656_v61 }
 0xa08   :  { %v661_v5 = vsel %vm660_vm6, %v1118_v58, %v657_v63 }
 0xa09   :  { %v666_v62 = vsel %vm663_vm7, %v665_v6, %v661_v5 }
 0xa0a   :  { %v687_v11 = vmul.f32 %v685_v9, %v666_v62 }
 0xa67   :  { %v690_v7 = vpop.permute.xlu0 %689 }
 0xa68   :  { %v692_v8 = vmul.f32 %v690_v7, %v666_v62 }
 0xa6a   :  { %694 = vrot.lane.b32.xlu1 %v692_v8, %s1209_s28 }
 0xadc   :  { %v695_v12 = vpop.permute.xlu1 %694 }
 0xadd   :  { %v1463_v36 = vadd.f32 %v695_v12, %v687_v11 }
 0xadf   :  { %1119 = vtanh.f32 %v1463_v36  ;;  %v785_v54 = vrot.slane %v1463_v36, 6 }
 0xae0   :  { %1121 = vpow2.f32 %v1030_v13 }
 0xae5   :  { %v1120_v24 = vpop.eup %1119 }
 0xae6   :  { %700 = vrot.lane.b32.xlu2 %v1120_v24, %s1209_s28  ;;  %v1122_v14 = vpop.eup %1121 }
 0xae7   :  { %v652_v15 = vadd.f32 1.0, %v1122_v14 }
 0xae9   :  { %1123 = vrcp.f32 %v652_v15  ;;  %v679_v45 = vand.u32 2147483648, %v652_v15  ;;  %vm673_vm12 = vweird.f32 %v652_v15  ;;  %v677_v26 = vand.u32 2147483647, %v652_v15 }
 0xaeb   :  { %v680_v17 = vor.u32 1.1754944e-38, %v679_v45  ;;  %vm678_vm15 = vcmp.eq.f32.partialorder %v677_v26, 8.507059e+37 }
 0xaef   :  { %v1124_v16 = vpop.eup %1123 }
 0xaf0   :  { %v669_v18 = vmul.f32 %v1124_v16, %v652_v15  ;;  %vm674_vm11 = vweird.f32 %v1124_v16 }
 0xaf1   :  { %vm675_vm13 = vmor %vm673_vm12, %vm674_vm11 }
 0xaf2   :  { %v670_v19 = vsub.f32 1.0, %v669_v18 }
 0xaf4   :  { %v671_v20 = vmul.f32 %v1124_v16, %v670_v19 }
 0xaf6   :  { %v672_v35 = vadd.f32 %v1124_v16, %v671_v20 }
 0xaf8   :  { %v676_v4 = vsel %vm675_vm13, %v1124_v16, %v672_v35 }
 0xaf9   :  { %v681_v22 = vsel %vm678_vm15, %v680_v17, %v676_v4 }
 0xb40   :  { %v701_v10 = vpop.permute.xlu2 %700 }
 0xb41   :  { %v703_v21 = vmul.f32 %v701_v10, %v681_v22 }
 0xb43   :  { %704 = vst.msk [vmem:[#allocation2 + $0x8] sm:$0xc] %vm309_vm3, %v703_v21  ;;  %v705_v25 = vpack.c.bf16 %v703_v21, %v703_v21 }
 0xb45   :  { %v707_v30 = vrot.slane %v705_v25, 1 }
 0xb47   :  { %1031 = vmatmul.msk.bf16.vlgmr.msrb.gmra.mxu2 %vm122_vm10, %v707_v30  ;;  %1032 = vmatmul.msk.bf16.vlgmr.msrb.gmra.mxu3 %vm122_vm10, %v707_v30 }
 0xbca   :  { %v720_v29 = vpop.f32.mrf.mxu2  ;;  %v733_v33 = vpop.f32.mrf.mxu3 }
 0xbcb   :  { %v740_v23 = vrot.slane %v733_v33, 4  ;;  %v739_v32 = vrot.slane %v720_v29, 4 }
 0xbcd   :  { %v744_v27 = vadd.f32 %v740_v23, %v1439_v3  ;;  %v743_v34 = vadd.f32 %v739_v32, %v1446_v2  ;;  %v915_v32 = vld [vmem:[%s1530_s4 + $0x38] sm:$0xff] }
 0xbcf   :  { %1125 = vtanh.f32 %v744_v27  ;;  %v1033_v37 = vmul.f32 -1.442695, %v743_v34  ;;  %v1034_v59 = vmul.f32 -1.442695, %v744_v27 }
 0xbd1   :  { %1127 = vpow2.f32 %v1033_v37 }
 0xbd2   :  { %v722_v28 = vpop.f32.mrf.mxu2  ;;  %v735_v31 = vpop.f32.mrf.mxu3 }
 0xbd5   :  { %v1126_v38 = vpop.eup %1125 }
 0xbd6   :  { %789 = vrot.lane.b32.xlu0 %v1126_v38, %s1209_s28  ;;  %v914_v38 = vld [vmem:[%s1530_s4 + $0x30] sm:$0xff] }
 0xbd7   :  { %v1128_v39 = vpop.eup %1127  ;;  %v919_v34 = vpack.c.bf16 %v915_v32, %v914_v38 }
 0xbd8   :  { %v751_v47 = vadd.f32 1.0, %v1128_v39 }
 0xbd9   :  { %931 = vmatpush.bf16.msra.mxu2 %v919_v34 }
 0xbda   :  { %1129 = vrcp.f32 %v751_v47  ;;  %v764_v46 = vand.u32 2147483648, %v751_v47  ;;  %vm758_vm0 = vweird.f32 %v751_v47  ;;  %v762_v48 = vand.u32 2147483647, %v751_v47 }
 0xbdc   :  { %v765_v50 = vor.u32 1.1754944e-38, %v764_v46  ;;  %vm763_vm2 = vcmp.eq.f32.partialorder %v762_v48, 8.507059e+37  ;;  %v912_v46 = vld [vmem:[%s1530_s4 + $0x20] sm:$0xff]  ;;  %v913_v48 = vld [vmem:[%s1530_s4 + $0x28] sm:$0xff] }
 0xbe0   :  { %v1130_v40 = vpop.eup %1129 }
 0xbe1   :  { %v754_v41 = vmul.f32 %v1130_v40, %v751_v47  ;;  %vm759_vm3 = vweird.f32 %v1130_v40 }
 0xbe2   :  { %vm760_vm1 = vmor %vm758_vm0, %vm759_vm3 }
 0xbe3   :  { %v755_v42 = vsub.f32 1.0, %v754_v41 }
 0xbe5   :  { %v756_v43 = vmul.f32 %v1130_v40, %v755_v42 }
 0xbe7   :  { %v757_v44 = vadd.f32 %v1130_v40, %v756_v43 }
 0xbe9   :  { %v761_v49 = vsel %vm760_vm1, %v1130_v40, %v757_v44  ;;  %vm954_vm1 = vcmask 261126  }
 0xbea   :  { %v766_v52 = vsel %vm763_vm2, %v765_v50, %v761_v49  ;;  %v918_v49 = vpack.c.bf16 %v913_v48, %v912_v46  ;;  %v910_v50 = vld [vmem:[%s1530_s4 + $0x10] sm:$0xff] }
 0xbeb   :  { %v787_v55 = vmul.f32 %v785_v54, %v766_v52  ;;  %v909_v54 = vld [vmem:[%s1530_s4 + $0x8] sm:$0xff] }
 0xbec   :  { %932 = vmatpush.bf16.msra.mxu2 %v918_v49 }
 0xc48   :  { %v790_v51 = vpop.permute.xlu0 %789 }
 0xc49   :  { %v792_v53 = vmul.f32 %v790_v51, %v766_v52  ;;  %v911_v51 = vld [vmem:[%s1530_s4 + $0x18] sm:$0xff] }
 0xc4a   :  { %v917_v52 = vpack.c.bf16 %v911_v51, %v910_v50 }
 0xc4b   :  { %794 = vrot.lane.b32.xlu1 %v792_v53, %s1209_s28  ;;  %v908_v53 = vld [vmem:[%s1530_s4] sm:$0xff]  ;;  %s1210_s4 = smov 96  }
 0xc4c   :  { %933 = vmatpush.bf16.msra.mxu2 %v917_v52 }
 0xcbd   :  { %v795_v56 = vpop.permute.xlu1 %794 }
 0xcbe   :  { %v1475_v57 = vadd.f32 %v795_v56, %v787_v55  ;;  %v916_v55 = vpack.c.bf16 %v909_v54, %v908_v53 }
 0xcc0   :  { %1131 = vtanh.f32 %v1475_v57  ;;  %v885_v37 = vrot.slane %v1475_v57, 6  ;;  %934 = vmatpush.bf16.msra.mxu2 %v916_v55 }
 0xcc1   :  { %1133 = vpow2.f32 %v1034_v59 }
 0xcc6   :  { %v1132_v58 = vpop.eup %1131 }
 0xcc7   :  { %800 = vrot.lane.b32.xlu2 %v1132_v58, %s1209_s28  ;;  %v1134_v60 = vpop.eup %1133 }
 0xcc8   :  { %v752_v61 = vadd.f32 1.0, %v1134_v60 }
 0xcca   :  { %1135 = vrcp.f32 %v752_v61  ;;  %v779_v7 = vand.u32 2147483648, %v752_v61  ;;  %vm773_vm9 = vweird.f32 %v752_v61  ;;  %v777_v62 = vand.u32 2147483647, %v752_v61 }
 0xccc   :  { %v780_v9 = vor.u32 1.1754944e-38, %v779_v7  ;;  %vm778_vm6 = vcmp.eq.f32.partialorder %v777_v62, 8.507059e+37  ;;  %v905_v62 = vld [vmem:[#allocation2] sm:$0xff] }
 0xcd0   :  { %v1136_v63 = vpop.eup %1135 }
 0xcd1   :  { %v769_v0 = vmul.f32 %v1136_v63, %v752_v61  ;;  %vm774_vm4 = vweird.f32 %v1136_v63 }
 0xcd2   :  { %vm775_vm5 = vmor %vm773_vm9, %vm774_vm4  ;;  %vm982_vm4 = vcmask 7174  }
 0xcd3   :  { %v770_v1 = vsub.f32 1.0, %v769_v0 }
 0xcd5   :  { %v771_v5 = vmul.f32 %v1136_v63, %v770_v1 }
 0xcd7   :  { %v772_v6 = vadd.f32 %v1136_v63, %v771_v5 }
 0xcd9   :  { %v776_v8 = vsel %vm775_vm5, %v1136_v63, %v772_v6 }
 0xcda   :  { %v781_v11 = vsel %vm778_vm6, %v780_v9, %v776_v8 }
 0xd21   :  { %v801_v12 = vpop.permute.xlu2 %800 }
 0xd22   :  { %v803_v36 = vmul.f32 %v801_v12, %v781_v11  ;;  %v1050_v11 = vld [vmem:[%s1532_s6] ss:$0 sm:$0xff]  ;;  %s992_s6 = sshll.u32 %s1535_s9, 4  ;;  %s993_s6 = int_to_ptr.hbm [resolvable:$true] %s992_s6 }
 0xd24   :  { %804 = vst.msk [vmem:[#allocation2 + $0x8] sm:$0x30] %vm410_vm14, %v803_v36  ;;  %v805_v24 = vpack.c.bf16 %v803_v36, %v803_v36 }
 0xd26   :  { %v807_v13 = vrot.slane %v805_v24, 2 }
 0xd28   :  { %1035 = vmatmul.msk.bf16.vlgmr.msra.gmra.mxu0 %vm122_vm10, %v807_v13  ;;  %1036 = vmatmul.msk.bf16.vlgmr.msra.gmra.mxu1 %vm122_vm10, %v807_v13 }
 0xda5   :  { %v820_v14 = vpop.f32.mrf.mxu0  ;;  %v833_v15 = vpop.f32.mrf.mxu1 }
 0xda6   :  { %v840_v16 = vrot.slane %v833_v15, 2  ;;  %v839_v45 = vrot.slane %v820_v14, 2  ;;  %v1051_v14 = vld [vmem:[%s1531_s5] ss:$0 sm:$0xff] }
 0xda8   :  { %v844_v18 = vadd.f32 %v840_v16, %v1439_v3  ;;  %v843_v26 = vadd.f32 %v839_v45, %v1446_v2 }
 0xdaa   :  { %1137 = vtanh.f32 %v844_v18  ;;  %v1037_v4 = vmul.f32 -1.442695, %v843_v26  ;;  %v1038_v42 = vmul.f32 -1.442695, %v844_v18 }
 0xdac   :  { %1139 = vpow2.f32 %v1037_v4 }
 0xdad   :  { %v822_v19 = vpop.f32.mrf.mxu0  ;;  %v835_v20 = vpop.f32.mrf.mxu1 }
 0xdae   :  { %v1052_v20 = vld [vmem:[#allocation3] ss:$0 sm:$0xff] }
 0xdb0   :  { %v1138_v35 = vpop.eup %1137 }
 0xdb1   :  { %889 = vrot.lane.b32.xlu0 %v1138_v35, %s1209_s28 }
 0xdb2   :  { %v1140_v17 = vpop.eup %1139 }
 0xdb3   :  { %v851_v22 = vadd.f32 1.0, %v1140_v17 }
 0xdb5   :  { %1141 = vrcp.f32 %v851_v22  ;;  %v864_v3 = vand.u32 2147483648, %v851_v22  ;;  %vm858_vm7 = vweird.f32 %v851_v22  ;;  %v862_v33 = vand.u32 2147483647, %v851_v22 }
 0xdb7   :  { %v865_v27 = vor.u32 1.1754944e-38, %v864_v3  ;;  %vm863_vm12 = vcmp.eq.f32.partialorder %v862_v33, 8.507059e+37 }
 0xdbb   :  { %v1142_v10 = vpop.eup %1141 }
 0xdbc   :  { %v854_v21 = vmul.f32 %v1142_v10, %v851_v22  ;;  %vm859_vm14 = vweird.f32 %v1142_v10 }
 0xdbd   :  { %vm860_vm11 = vmor %vm858_vm7, %vm859_vm14 }
 0xdbe   :  { %v855_v25 = vsub.f32 1.0, %v854_v21 }
 0xdc0   :  { %v856_v30 = vmul.f32 %v1142_v10, %v855_v25 }
 0xdc2   :  { %v857_v29 = vadd.f32 %v1142_v10, %v856_v30 }
 0xdc4   :  { %v861_v23 = vsel %vm860_vm11, %v1142_v10, %v857_v29 }
 0xdc5   :  { %v866_v2 = vsel %vm863_vm12, %v865_v27, %v861_v23 }
 0xdc6   :  { %v887_v39 = vmul.f32 %v885_v37, %v866_v2 }
 0xe23   :  { %v890_v28 = vpop.permute.xlu0 %889 }
 0xe24   :  { %v892_v31 = vmul.f32 %v890_v28, %v866_v2 }
 0xe26   :  { %894 = vrot.lane.b32.xlu1 %v892_v31, %s1209_s28 }
 0xe98   :  { %v895_v47 = vpop.permute.xlu1 %894 }
 0xe99   :  { %v897_v40 = vadd.f32 %v895_v47, %v887_v39 }
 0xe9b   :  { %1143 = vtanh.f32 %v897_v40 }
 0xe9c   :  { %1145 = vpow2.f32 %v1038_v42 }
 0xea1   :  { %v1144_v41 = vpop.eup %1143 }
 0xea2   :  { %900 = vrot.lane.b32.xlu2 %v1144_v41, %s1209_s28  ;;  %v1146_v43 = vpop.eup %1145  ;;  %s1213_s28 = smov 8  }
 0xea3   :  { %v852_v44 = vadd.f32 1.0, %v1146_v43 }
 0xea5   :  { %1147 = vrcp.f32 %v852_v44  ;;  %v879_v61 = vand.u32 2147483648, %v852_v44  ;;  %vm873_vm15 = vweird.f32 %v852_v44  ;;  %v877_v63 = vand.u32 2147483647, %v852_v44 }
 0xea7   :  { %v880_v1 = vor.u32 1.1754944e-38, %v879_v61  ;;  %vm878_vm0 = vcmp.eq.f32.partialorder %v877_v63, 8.507059e+37 }
 0xeab   :  { %v1148_v56 = vpop.eup %1147 }
 0xeac   :  { %v869_v57 = vmul.f32 %v1148_v56, %v852_v44  ;;  %vm874_vm13 = vweird.f32 %v1148_v56 }
 0xead   :  { %vm875_vm3 = vmor %vm873_vm15, %vm874_vm13 }
 0xeae   :  { %v870_v58 = vsub.f32 1.0, %v869_v57 }
 0xeb0   :  { %v871_v59 = vmul.f32 %v1148_v56, %v870_v58 }
 0xeb2   :  { %v872_v60 = vadd.f32 %v1148_v56, %v871_v59 }
 0xeb4   :  { %v876_v0 = vsel %vm875_vm3, %v1148_v56, %v872_v60 }
 0xeb5   :  { %v881_v5 = vsel %vm878_vm0, %v880_v1, %v876_v0 }
 0xefc   :  { %v901_v6 = vpop.permute.xlu2 %900 }
 0xefd   :  { %v903_v7 = vmul.f32 %v901_v6, %v881_v5 }
 0xeff   :  { %904 = vst.msk [vmem:[#allocation2 + $0x8] sm:$0xc0] %vm511_vm8, %v903_v7  ;;  %945 = vrot.lane.b32.xlu0 %v903_v7, %s1210_s4  ;;  %vm941_vm8 = vcmask 261120  }
 0xf06   :  { %v906_v8 = vld [vmem:[#allocation2 + $0x8] sm:$0xff] }
 0xf07   :  { %v907_v9 = vpack.c.bf16 %v906_v8, %v905_v62 }
 0xf09   :  { %1039 = vmatmul.msk.bf16.vlgmr.msra.gmra.mxu2 %vm122_vm10, %v907_v9 }
 0xf71   :  { %v946_v12 = vpop.permute.xlu0 %945 }
 0xf72   :  { %v948_v36 = vmul.f32 %v946_v12, %v903_v7 }
 0xf74   :  { %v953_v24 = vmul.f32 %v1050_v11, %v948_v36 }
 0xf76   :  { %v955_v13 = vsel %vm954_vm1, %v953_v24, 0.0 }
 0xf77   :  { %956 = vadd.xlane.f32.xlu1 %v955_v13 }
 0xf8c   :  { %v936_v15 = vpop.f32.mrf.mxu2 }
 0xf8d   :  { %v937_v16 = vadd.f32 %v1051_v14, %v936_v15 }
 0xf8f   :  { %942 = vst.msk [vmem:[#allocation7] sm:$0xff] %vm941_vm8, %v937_v16 }
 0xf94   :  { %v938_v18 = vpop.f32.mrf.mxu2 }
 0xf95   :  { %v939_v19 = vadd.f32 %v1051_v14, %v938_v18 }
 0xf97   :  { %943 = vst.msk [vmem:[#allocation7 + $0x8] sm:$0xff] %vm941_vm8, %v939_v19 }
 0xf98   :  { %998 = dma.vmem_to_hbm [thread:$0]  %s991_s0, 256, %s993_s6, [#allocation6], %s1212_s27, %s1212_s27, %s1213_s28  }
 0xfea   :  { %v957_v35 = vpop.xlane.xlu1 %956 }
 0xfeb   :  { %v962_v45 = vadd.f32 %v1052_v20, %v957_v35 }
 0xfed   :  { %v1040_v26 = vmul.f32 -1.442695, %v962_v45 }
 0xfef   :  { %1149 = vpow2.f32 %v1040_v26 }
 0xff5   :  { %v1150_v4 = vpop.eup %1149 }
 0xff6   :  { %v966_v17 = vadd.f32 1.0, %v1150_v4 }
 0xff8   :  { %1151 = vrcp.f32 %v966_v17  ;;  %v978_v25 = vand.u32 2147483648, %v966_v17  ;;  %v976_v29 = vand.u32 2147483647, %v966_v17  ;;  %vm972_vm2 = vweird.f32 %v966_v17 }
 0xffa   :  { %v979_v33 = vor.u32 1.1754944e-38, %v978_v25  ;;  %vm977_vm5 = vcmp.eq.f32.partialorder %v976_v29, 8.507059e+37 }
 0xffe   :  { %v1152_v22 = vpop.eup %1151 }
 0xfff   :  { %v968_v10 = vmul.f32 %v1152_v22, %v966_v17  ;;  %vm973_vm10 = vweird.f32 %v1152_v22 }
0x1000   :  { %vm974_vm9 = vmor %vm972_vm2, %vm973_vm10 }
0x1001   :  { %v969_v21 = vsub.f32 1.0, %v968_v10 }
0x1003   :  { %v970_v30 = vmul.f32 %v1152_v22, %v969_v21 }
0x1005   :  { %v971_v3 = vadd.f32 %v1152_v22, %v970_v30 }
0x1007   :  { %v975_v23 = vsel %vm974_vm9, %v1152_v22, %v971_v3 }
0x1008   :  { %v980_v27 = vsel %vm977_vm5, %v979_v33, %v975_v23 }
0x1009   :  { %983 = vst.msk [vmem:[%s1534_s8 - $0x6] sm:$0xc0] %vm982_vm4, %v980_v27 }
0x100a   :  { %1203 = dma.done.wait [#allocation6], 256  }
0x100b   :  { %1204 = vsyncadd [#allocation6], 4294967040 }
0x100c   :  { %1005 = vsyncpa [#allocation5], 1 }
0x100d   :  { %1006 = vsyncpa [#allocation6], 1 }

</bundles_post_ra>
